<compile_context>
chip_gen: v5e
topology: v5e:2x2
jax: 0.10.0
libtpu: 0.0.40
codegen_flags: <defaults>
</compile_context>

<pallas_src>
import math
import functools

import jax
import jax.numpy as jnp
from jax import lax
from jax.experimental import pallas as pl
from jax.experimental.pallas import tpu as pltpu


def _heads_per_group(num_heads, head_dim):
    """Largest divisor g of num_heads with g*head_dim <= 128 (lane-dense stores)."""
    best = 1
    for g in range(1, num_heads + 1):
        if num_heads % g == 0 and g * head_dim <= 128:
            best = g
    return best


def _pick_q_tile(seq_len):
    """Query-tile length: full sequence if short, else a divisor >= 128/256."""
    if seq_len <= 256:
        return seq_len
    for t in (256, 128, 64, 32, 16, 8):
        if seq_len % t == 0:
            return t
    return seq_len


def _vmem_limit_bytes():
    """~75% of physical VMEM, capped at 100 MiB (96 MiB on v5e/v6e, 48 MiB v7x)."""
    cap = 64 * 1024 * 1024
    try:
        info_cap = int(pltpu.get_tpu_info().vmem_capacity_bytes)
        if info_cap > 0:
            cap = info_cap
    except Exception:
        pass
    return int(min(cap * 3 // 4, 100 * 1024 * 1024))


def _bert_self_attn_kernel(x_q_ref, x_kv_ref, wq_ref, wkv_ref, bq_ref, bkv_ref,
                           mask_ref, out_ref, q_scr, k_scr, v_scr,
                           *, num_heads, head_dim, heads_per_group):
    H = num_heads * head_dim
    qi = pl.program_id(1)

    # ---- K/V projection: once per batch element (first query tile) ----------
    @pl.when(qi == 0)
    def _project_kv():
        kv = jnp.dot(x_kv_ref[0], wkv_ref[...],
                     preferred_element_type=jnp.float32) + bkv_ref[...]   # [S, 2H] f32
        kv_bf = kv.astype(jnp.bfloat16)                  # cast to bf16 exactly once
        for h in range(num_heads):
            k_scr[h] = kv_bf[:, h * head_dim:(h + 1) * head_dim]
            v_scr[h] = kv_bf[:, H + h * head_dim:H + (h + 1) * head_dim]

    # ---- Q projection for this tile (1/sqrt(hd) pre-folded into Wq/bq) ------
    q = (jnp.dot(x_q_ref[0], wq_ref[...], preferred_element_type=jnp.float32)
         + bq_ref[...]).astype(jnp.bfloat16)             # [TQ, H]
    for h in range(num_heads):
        q_scr[h] = q[:, h * head_dim:(h + 1) * head_dim]  # retire q vregs early

    mask_row = mask_ref[0]                                # [1, S] additive mask, f32

    # ---- per-head attention; retire contexts in lane-dense head groups ------
    num_groups = num_heads // heads_per_group
    for g in range(num_groups):
        ctxs = []
        for hh in range(heads_per_group):
            h = g * heads_per_group + hh
            qh = q_scr[h]                                 # [TQ, hd] bf16 (aligned read)
            kh = k_scr[h]                                 # [S,  hd] bf16
            vh = v_scr[h]                                 # [S,  hd] bf16

            # scores = Q @ K^T : contract last dims of both -> no transpose.
            scores = lax.dot_general(
                qh, kh, dimension_numbers=(((1,), (1,)), ((), ())),
                preferred_element_type=jnp.float32)       # [TQ, S] f32
            scores = scores + mask_row                    # broadcast over query rows

            # numerically-stable softmax (f32); reciprocal on the EUP slot.
            m = jnp.max(scores, axis=-1, keepdims=True)
            p = jnp.exp(scores - m)
            denom = jnp.sum(p, axis=-1, keepdims=True)
            p = p * pl.reciprocal(denom, approx=True)

            # TODO(synk): attention-probs dropout omitted (eval / inference mode).

            ctxs.append(jnp.dot(p.astype(jnp.bfloat16), vh,
                                preferred_element_type=jnp.float32))   # [TQ, hd]

        block = ctxs[0] if heads_per_group == 1 else jnp.concatenate(ctxs, axis=-1)
        c0 = g * heads_per_group * head_dim
        c1 = c0 + heads_per_group * head_dim
        out_ref[0, :, c0:c1] = block.astype(out_ref.dtype)


def _build_call(B, S, H, num_heads, head_dim, tq, heads_per_group,
                single_buffer_resident):
    kernel = functools.partial(
        _bert_self_attn_kernel, num_heads=num_heads, head_dim=head_dim,
        heads_per_group=heads_per_group)

    resident_kw = {}
    if single_buffer_resident:
        # Constant index_map -> no re-DMA; single buffer halves their VMEM cost.
        resident_kw = dict(pipeline_mode=pl.Buffered(1))

    num_q_tiles = S // tq

    cost = pl.CostEstimate(
        flops=2 * B * S * H * (3 * H) + 4 * B * num_heads * S * S * head_dim,
        transcendentals=B * num_heads * S * S,
        bytes_accessed=(2 * B * S * H * 2            # x read twice (Q tiles + K/V)
                        + 3 * H * H * 2 + 3 * H * 4  # weights (bf16) + biases (f32)
                        + B * S * 4                  # mask rows
                        + B * S * H * 4),            # f32 output
    )

    return pl.pallas_call(
        kernel,
        out_shape=jax.ShapeDtypeStruct((B, S, H), jnp.float32),
        grid_spec=pltpu.PrefetchScalarGridSpec(
            num_scalar_prefetch=0,
            grid=(B, num_q_tiles),
            in_specs=[
                pl.BlockSpec((1, tq, H), lambda b, q: (b, q, 0)),           # x (Q tile)
                pl.BlockSpec((1, S, H), lambda b, q: (b, 0, 0)),            # x (K/V, per batch)
                pl.BlockSpec((H, H), lambda b, q: (0, 0), **resident_kw),       # Wq (scaled)
                pl.BlockSpec((H, 2 * H), lambda b, q: (0, 0), **resident_kw),   # Wkv
                pl.BlockSpec((1, H), lambda b, q: (0, 0), **resident_kw),       # bq (scaled)
                pl.BlockSpec((1, 2 * H), lambda b, q: (0, 0), **resident_kw),   # bkv
                pl.BlockSpec((1, 1, S), lambda b, q: (b, 0, 0)),            # additive row mask
            ],
            out_specs=pl.BlockSpec((1, tq, H), lambda b, q: (b, q, 0)),
            scratch_shapes=[
                pltpu.VMEM((num_heads, tq, head_dim), jnp.bfloat16),  # Q staging
                pltpu.VMEM((num_heads, S, head_dim), jnp.bfloat16),   # K (per batch)
                pltpu.VMEM((num_heads, S, head_dim), jnp.bfloat16),   # V (per batch)
            ],
        ),
        compiler_params=pltpu.CompilerParams(
            dimension_semantics=("parallel", "arbitrary"),
            vmem_limit_bytes=_vmem_limit_bytes(),
        ),
        cost_estimate=cost,
    )


def bert_self_attention(hidden_states, params, attention_mask=None, *, num_heads):
    """hidden_states: [B, S, H] float32.
    attention_mask: standard BERT additive mask broadcastable to [B, 1, 1, S]
    (must not vary per head or per query row)."""
    B, S, H = hidden_states.shape
    assert H % num_heads == 0
    head_dim = H // num_heads
    scale = 1.0 / math.sqrt(head_dim)

    # nn.Linear weights are [out, in]; pre-transpose so the kernel computes
    # x @ W.  Fold 1/sqrt(head_dim) into the Q weight + bias (zero runtime cost).
    wq = (params["wq"].T * scale).astype(jnp.bfloat16)                      # [H, H]
    wkv = jnp.concatenate([params["wk"].T, params["wv"].T],
                          axis=1).astype(jnp.bfloat16)                      # [H, 2H]
    bq = (params["bq"] * scale).reshape(1, H).astype(jnp.float32)           # [1, H]
    bkv = jnp.concatenate([params["bk"], params["bv"]],
                          axis=0).reshape(1, 2 * H).astype(jnp.float32)     # [1, 2H]

    # Compact [B, 1, S] row mask; broadcast against scores inside the kernel.
    if attention_mask is None:
        mask_rows = jnp.zeros((B, 1, S), jnp.float32)
    else:
        mask_rows = jnp.broadcast_to(
            attention_mask, (B, 1, 1, S)).reshape(B, 1, S).astype(jnp.float32)

    x_bf = hidden_states.astype(jnp.bfloat16)

    tq = _pick_q_tile(S)
    hpg = _heads_per_group(num_heads, head_dim)

    args = (x_bf, x_bf, wq, wkv, bq, bkv, mask_rows)
    try:
        return _build_call(B, S, H, num_heads, head_dim, tq, hpg, True)(*args)
    except Exception:
        # Fallback if single-buffered resident blocks (pl.Buffered(1)) are
        # unsupported by this JAX version; default double-buffering instead.
        return _build_call(B, S, H, num_heads, head_dim, tq, hpg, False)(*args)


def _reference(hidden_states, params, attention_mask, num_heads):
    B, S, H = hidden_states.shape
    hd = H // num_heads

    def lin(x, w, b):
        return x @ w.T + b

    q = lin(hidden_states, params["wq"], params["bq"]).reshape(B, S, num_heads, hd).transpose(0, 2, 1, 3)
    k = lin(hidden_states, params["wk"], params["bk"]).reshape(B, S, num_heads, hd).transpose(0, 2, 1, 3)
    v = lin(hidden_states, params["wv"], params["bv"]).reshape(B, S, num_heads, hd).transpose(0, 2, 1, 3)
    scores = jnp.einsum("bhqd,bhkd->bhqk", q, k) / math.sqrt(hd)
    if attention_mask is not None:
        scores = scores + attention_mask
    probs = jax.nn.softmax(scores, axis=-1)
    ctx = jnp.einsum("bhqk,bhkd->bhqd", probs, v)
    return ctx.transpose(0, 2, 1, 3).reshape(B, S, H)


if __name__ == "__main__":
    # Small config: hidden=32, heads=4 -> head_dim=8, batch=2, seq=8.
    B, S, H, NH = 2, 8, 32, 4

    key = jax.random.PRNGKey(0)
    ks = jax.random.split(key, 8)
    params = {
        "wq": 0.02 * jax.random.normal(ks[0], (H, H), jnp.float32),
        "bq": 0.01 * jax.random.normal(ks[1], (H,), jnp.float32),
        "wk": 0.02 * jax.random.normal(ks[2], (H, H), jnp.float32),
        "bk": 0.01 * jax.random.normal(ks[3], (H,), jnp.float32),
        "wv": 0.02 * jax.random.normal(ks[4], (H, H), jnp.float32),
        "bv": 0.01 * jax.random.normal(ks[5], (H,), jnp.float32),
    }
    hidden_states = jax.random.normal(ks[6], (B, S, H), jnp.float32)

    # Standard BERT additive mask [B, 1, 1, S]: mask out the last 2 tokens of batch 1.
    valid = jnp.ones((B, S), jnp.float32).at[1, -2:].set(0.0)
    attention_mask = (1.0 - valid)[:, None, None, :] * (-10000.0)

    out = bert_self_attention(hidden_states, params, attention_mask, num_heads=NH)
    out = jax.block_until_ready(out)

    ref = _reference(hidden_states, params, attention_mask, NH)
    assert out.shape == (B, S, H)
    # bf16 MXU operands + approx reciprocal -> relaxed tolerance vs f32 reference.
    assert jnp.allclose(out, ref, atol=1e-2, rtol=1e-2), "mismatch vs reference"

    print("KERNEL_OK")
</pallas_src>

<mosaic_0001>
module attributes {stable_mosaic.version = 11 : i64} {
  func.func @_bert_self_attn_kernel(%arg0: i32, %arg1: i32, %arg2: memref<1x8x32xbf16, #tpu.memory_space<vmem>>, %arg3: memref<1x8x32xbf16, #tpu.memory_space<vmem>>, %arg4: memref<32x32xbf16, #tpu.memory_space<vmem>>, %arg5: memref<32x64xbf16, #tpu.memory_space<vmem>>, %arg6: memref<1x32xf32, #tpu.memory_space<vmem>>, %arg7: memref<1x64xf32, #tpu.memory_space<vmem>>, %arg8: memref<1x1x8xf32, #tpu.memory_space<vmem>>, %arg9: memref<1x8x32xf32, #tpu.memory_space<vmem>>, %arg10: memref<4x8x8xbf16, #tpu.memory_space<vmem>>, %arg11: memref<4x8x8xbf16, #tpu.memory_space<vmem>>, %arg12: memref<4x8x8xbf16, #tpu.memory_space<vmem>>) attributes {dimension_semantics = [#tpu.dimension_semantics<parallel>, #tpu.dimension_semantics<arbitrary>], iteration_bounds = array<i64: 2, 1>, scalar_prefetch = 0 : i64, scratch_operands = 3 : i64, tpu.core_type = #tpu.core_type<tc>, window_params = [{transform_indices = @transform_0, window_bounds = array<i64: 1, 8, 32>}, {transform_indices = @transform_1, window_bounds = array<i64: 1, 8, 32>}, {pipeline_mode = #tpu.pipeline_mode<synchronous>, transform_indices = @transform_2, window_bounds = array<i64: 32, 32>}, {pipeline_mode = #tpu.pipeline_mode<synchronous>, transform_indices = @transform_3, window_bounds = array<i64: 32, 64>}, {pipeline_mode = #tpu.pipeline_mode<synchronous>, transform_indices = @transform_4, window_bounds = array<i64: 1, 32>}, {pipeline_mode = #tpu.pipeline_mode<synchronous>, transform_indices = @transform_5, window_bounds = array<i64: 1, 64>}, {transform_indices = @transform_6, window_bounds = array<i64: 1, 1, 8>}, {transform_indices = @transform_7, window_bounds = array<i64: 1, 8, 32>}]} {
    %c0_i32 = arith.constant 0 : i32
    %0 = arith.cmpi eq, %arg1, %c0_i32 : i32
    %1 = arith.extui %0 : i1 to i32
    %c0_i32_0 = arith.constant 0 : i32
    %2 = arith.cmpi ne, %1, %c0_i32_0 : i32
    scf.if %2 {
      %c0_74 = arith.constant 0 : index
      %c0_75 = arith.constant 0 : index
      %c0_76 = arith.constant 0 : index
      %117 = vector.load %arg3[%c0_74, %c0_75, %c0_76] : memref<1x8x32xbf16, #tpu.memory_space<vmem>>, vector<1x8x32xbf16>
      %118 = vector.shape_cast %117 : vector<1x8x32xbf16> to vector<8x32xbf16>
      %c0_77 = arith.constant 0 : index
      %c0_78 = arith.constant 0 : index
      %119 = vector.load %arg5[%c0_77, %c0_78] : memref<32x64xbf16, #tpu.memory_space<vmem>>, vector<32x64xbf16>
      %cst_79 = arith.constant dense<0.000000e+00> : vector<8x64xf32>
      %120 = tpu.matmul %118, %119, %cst_79 {dimension_numbers = #tpu.dot_dimension_numbers<[1], [0], [0], [1], [0, 0, 1, 1], [], []>} : vector<8x32xbf16>, vector<32x64xbf16>, vector<8x64xf32> -> vector<8x64xf32>
      %c0_80 = arith.constant 0 : index
      %c0_81 = arith.constant 0 : index
      %121 = vector.load %arg7[%c0_80, %c0_81] : memref<1x64xf32, #tpu.memory_space<vmem>>, vector<1x64xf32>
      %122 = vector.broadcast %121 : vector<1x64xf32> to vector<8x64xf32>
      %123 = arith.addf %120, %122 : vector<8x64xf32>
      %124 = arith.truncf %123 : vector<8x64xf32> to vector<8x64xbf16>
      %125 = vector.extract_strided_slice %124 {offsets = [0, 0], sizes = [8, 8], strides = [1, 1]} : vector<8x64xbf16> to vector<8x8xbf16>
      %c0_82 = arith.constant 0 : index
      %c0_83 = arith.constant 0 : index
      %c0_84 = arith.constant 0 : index
      %126 = vector.load %arg11[%c0_82, %c0_83, %c0_84] : memref<4x8x8xbf16, #tpu.memory_space<vmem>>, vector<1x8x8xbf16>
      %127 = vector.shape_cast %126 : vector<1x8x8xbf16> to vector<8x8xbf16>
      %128 = vector.shape_cast %125 : vector<8x8xbf16> to vector<1x8x8xbf16>
      tpu.vector_store %arg11[%c0_82, %c0_83, %c0_84], %128 {strides = array<i32>} : memref<4x8x8xbf16, #tpu.memory_space<vmem>>, vector<1x8x8xbf16>,
      %129 = vector.extract_strided_slice %124 {offsets = [0, 32], sizes = [8, 8], strides = [1, 1]} : vector<8x64xbf16> to vector<8x8xbf16>
      %c0_85 = arith.constant 0 : index
      %c0_86 = arith.constant 0 : index
      %c0_87 = arith.constant 0 : index
      %130 = vector.load %arg12[%c0_85, %c0_86, %c0_87] : memref<4x8x8xbf16, #tpu.memory_space<vmem>>, vector<1x8x8xbf16>
      %131 = vector.shape_cast %130 : vector<1x8x8xbf16> to vector<8x8xbf16>
      %132 = vector.shape_cast %129 : vector<8x8xbf16> to vector<1x8x8xbf16>
      tpu.vector_store %arg12[%c0_85, %c0_86, %c0_87], %132 {strides = array<i32>} : memref<4x8x8xbf16, #tpu.memory_space<vmem>>, vector<1x8x8xbf16>,
      %133 = vector.extract_strided_slice %124 {offsets = [0, 8], sizes = [8, 8], strides = [1, 1]} : vector<8x64xbf16> to vector<8x8xbf16>
      %c1_88 = arith.constant 1 : index
      %c0_89 = arith.constant 0 : index
      %c0_90 = arith.constant 0 : index
      %134 = vector.load %arg11[%c1_88, %c0_89, %c0_90] : memref<4x8x8xbf16, #tpu.memory_space<vmem>>, vector<1x8x8xbf16>
      %135 = vector.shape_cast %134 : vector<1x8x8xbf16> to vector<8x8xbf16>
      %136 = vector.shape_cast %133 : vector<8x8xbf16> to vector<1x8x8xbf16>
      tpu.vector_store %arg11[%c1_88, %c0_89, %c0_90], %136 {strides = array<i32>} : memref<4x8x8xbf16, #tpu.memory_space<vmem>>, vector<1x8x8xbf16>,
      %137 = vector.extract_strided_slice %124 {offsets = [0, 40], sizes = [8, 8], strides = [1, 1]} : vector<8x64xbf16> to vector<8x8xbf16>
      %c1_91 = arith.constant 1 : index
      %c0_92 = arith.constant 0 : index
      %c0_93 = arith.constant 0 : index
      %138 = vector.load %arg12[%c1_91, %c0_92, %c0_93] : memref<4x8x8xbf16, #tpu.memory_space<vmem>>, vector<1x8x8xbf16>
      %139 = vector.shape_cast %138 : vector<1x8x8xbf16> to vector<8x8xbf16>
      %140 = vector.shape_cast %137 : vector<8x8xbf16> to vector<1x8x8xbf16>
      tpu.vector_store %arg12[%c1_91, %c0_92, %c0_93], %140 {strides = array<i32>} : memref<4x8x8xbf16, #tpu.memory_space<vmem>>, vector<1x8x8xbf16>,
      %141 = vector.extract_strided_slice %124 {offsets = [0, 16], sizes = [8, 8], strides = [1, 1]} : vector<8x64xbf16> to vector<8x8xbf16>
      %c2_94 = arith.constant 2 : index
      %c0_95 = arith.constant 0 : index
      %c0_96 = arith.constant 0 : index
      %142 = vector.load %arg11[%c2_94, %c0_95, %c0_96] : memref<4x8x8xbf16, #tpu.memory_space<vmem>>, vector<1x8x8xbf16>
      %143 = vector.shape_cast %142 : vector<1x8x8xbf16> to vector<8x8xbf16>
      %144 = vector.shape_cast %141 : vector<8x8xbf16> to vector<1x8x8xbf16>
      tpu.vector_store %arg11[%c2_94, %c0_95, %c0_96], %144 {strides = array<i32>} : memref<4x8x8xbf16, #tpu.memory_space<vmem>>, vector<1x8x8xbf16>,
      %145 = vector.extract_strided_slice %124 {offsets = [0, 48], sizes = [8, 8], strides = [1, 1]} : vector<8x64xbf16> to vector<8x8xbf16>
      %c2_97 = arith.constant 2 : index
      %c0_98 = arith.constant 0 : index
      %c0_99 = arith.constant 0 : index
      %146 = vector.load %arg12[%c2_97, %c0_98, %c0_99] : memref<4x8x8xbf16, #tpu.memory_space<vmem>>, vector<1x8x8xbf16>
      %147 = vector.shape_cast %146 : vector<1x8x8xbf16> to vector<8x8xbf16>
      %148 = vector.shape_cast %145 : vector<8x8xbf16> to vector<1x8x8xbf16>
      tpu.vector_store %arg12[%c2_97, %c0_98, %c0_99], %148 {strides = array<i32>} : memref<4x8x8xbf16, #tpu.memory_space<vmem>>, vector<1x8x8xbf16>,
      %149 = vector.extract_strided_slice %124 {offsets = [0, 24], sizes = [8, 8], strides = [1, 1]} : vector<8x64xbf16> to vector<8x8xbf16>
      %c3_100 = arith.constant 3 : index
      %c0_101 = arith.constant 0 : index
      %c0_102 = arith.constant 0 : index
      %150 = vector.load %arg11[%c3_100, %c0_101, %c0_102] : memref<4x8x8xbf16, #tpu.memory_space<vmem>>, vector<1x8x8xbf16>
      %151 = vector.shape_cast %150 : vector<1x8x8xbf16> to vector<8x8xbf16>
      %152 = vector.shape_cast %149 : vector<8x8xbf16> to vector<1x8x8xbf16>
      tpu.vector_store %arg11[%c3_100, %c0_101, %c0_102], %152 {strides = array<i32>} : memref<4x8x8xbf16, #tpu.memory_space<vmem>>, vector<1x8x8xbf16>,
      %153 = vector.extract_strided_slice %124 {offsets = [0, 56], sizes = [8, 8], strides = [1, 1]} : vector<8x64xbf16> to vector<8x8xbf16>
      %c3_103 = arith.constant 3 : index
      %c0_104 = arith.constant 0 : index
      %c0_105 = arith.constant 0 : index
      %154 = vector.load %arg12[%c3_103, %c0_104, %c0_105] : memref<4x8x8xbf16, #tpu.memory_space<vmem>>, vector<1x8x8xbf16>
      %155 = vector.shape_cast %154 : vector<1x8x8xbf16> to vector<8x8xbf16>
      %156 = vector.shape_cast %153 : vector<8x8xbf16> to vector<1x8x8xbf16>
      tpu.vector_store %arg12[%c3_103, %c0_104, %c0_105], %156 {strides = array<i32>} : memref<4x8x8xbf16, #tpu.memory_space<vmem>>, vector<1x8x8xbf16>,
    } else {
    }
    %c0 = arith.constant 0 : index
    %c0_1 = arith.constant 0 : index
    %c0_2 = arith.constant 0 : index
    %3 = vector.load %arg2[%c0, %c0_1, %c0_2] : memref<1x8x32xbf16, #tpu.memory_space<vmem>>, vector<1x8x32xbf16>
    %4 = vector.shape_cast %3 : vector<1x8x32xbf16> to vector<8x32xbf16>
    %c0_3 = arith.constant 0 : index
    %c0_4 = arith.constant 0 : index
    %5 = vector.load %arg4[%c0_3, %c0_4] : memref<32x32xbf16, #tpu.memory_space<vmem>>, vector<32x32xbf16>
    %cst = arith.constant dense<0.000000e+00> : vector<8x32xf32>
    %6 = tpu.matmul %4, %5, %cst {dimension_numbers = #tpu.dot_dimension_numbers<[1], [0], [0], [1], [0, 0, 1, 1], [], []>} : vector<8x32xbf16>, vector<32x32xbf16>, vector<8x32xf32> -> vector<8x32xf32>
    %c0_5 = arith.constant 0 : index
    %c0_6 = arith.constant 0 : index
    %7 = vector.load %arg6[%c0_5, %c0_6] : memref<1x32xf32, #tpu.memory_space<vmem>>, vector<1x32xf32>
    %8 = vector.broadcast %7 : vector<1x32xf32> to vector<8x32xf32>
    %9 = arith.addf %6, %8 : vector<8x32xf32>
    %10 = arith.truncf %9 : vector<8x32xf32> to vector<8x32xbf16>
    %11 = vector.extract_strided_slice %10 {offsets = [0, 0], sizes = [8, 8], strides = [1, 1]} : vector<8x32xbf16> to vector<8x8xbf16>
    %c0_7 = arith.constant 0 : index
    %c0_8 = arith.constant 0 : index
    %c0_9 = arith.constant 0 : index
    %12 = vector.load %arg10[%c0_7, %c0_8, %c0_9] : memref<4x8x8xbf16, #tpu.memory_space<vmem>>, vector<1x8x8xbf16>
    %13 = vector.shape_cast %12 : vector<1x8x8xbf16> to vector<8x8xbf16>
    %14 = vector.shape_cast %11 : vector<8x8xbf16> to vector<1x8x8xbf16>
    tpu.vector_store %arg10[%c0_7, %c0_8, %c0_9], %14 {strides = array<i32>} : memref<4x8x8xbf16, #tpu.memory_space<vmem>>, vector<1x8x8xbf16>,
    %15 = vector.extract_strided_slice %10 {offsets = [0, 8], sizes = [8, 8], strides = [1, 1]} : vector<8x32xbf16> to vector<8x8xbf16>
    %c1 = arith.constant 1 : index
    %c0_10 = arith.constant 0 : index
    %c0_11 = arith.constant 0 : index
    %16 = vector.load %arg10[%c1, %c0_10, %c0_11] : memref<4x8x8xbf16, #tpu.memory_space<vmem>>, vector<1x8x8xbf16>
    %17 = vector.shape_cast %16 : vector<1x8x8xbf16> to vector<8x8xbf16>
    %18 = vector.shape_cast %15 : vector<8x8xbf16> to vector<1x8x8xbf16>
    tpu.vector_store %arg10[%c1, %c0_10, %c0_11], %18 {strides = array<i32>} : memref<4x8x8xbf16, #tpu.memory_space<vmem>>, vector<1x8x8xbf16>,
    %19 = vector.extract_strided_slice %10 {offsets = [0, 16], sizes = [8, 8], strides = [1, 1]} : vector<8x32xbf16> to vector<8x8xbf16>
    %c2 = arith.constant 2 : index
    %c0_12 = arith.constant 0 : index
    %c0_13 = arith.constant 0 : index
    %20 = vector.load %arg10[%c2, %c0_12, %c0_13] : memref<4x8x8xbf16, #tpu.memory_space<vmem>>, vector<1x8x8xbf16>
    %21 = vector.shape_cast %20 : vector<1x8x8xbf16> to vector<8x8xbf16>
    %22 = vector.shape_cast %19 : vector<8x8xbf16> to vector<1x8x8xbf16>
    tpu.vector_store %arg10[%c2, %c0_12, %c0_13], %22 {strides = array<i32>} : memref<4x8x8xbf16, #tpu.memory_space<vmem>>, vector<1x8x8xbf16>,
    %23 = vector.extract_strided_slice %10 {offsets = [0, 24], sizes = [8, 8], strides = [1, 1]} : vector<8x32xbf16> to vector<8x8xbf16>
    %c3 = arith.constant 3 : index
    %c0_14 = arith.constant 0 : index
    %c0_15 = arith.constant 0 : index
    %24 = vector.load %arg10[%c3, %c0_14, %c0_15] : memref<4x8x8xbf16, #tpu.memory_space<vmem>>, vector<1x8x8xbf16>
    %25 = vector.shape_cast %24 : vector<1x8x8xbf16> to vector<8x8xbf16>
    %26 = vector.shape_cast %23 : vector<8x8xbf16> to vector<1x8x8xbf16>
    tpu.vector_store %arg10[%c3, %c0_14, %c0_15], %26 {strides = array<i32>} : memref<4x8x8xbf16, #tpu.memory_space<vmem>>, vector<1x8x8xbf16>,
    %c0_16 = arith.constant 0 : index
    %c0_17 = arith.constant 0 : index
    %c0_18 = arith.constant 0 : index
    %27 = vector.load %arg8[%c0_16, %c0_17, %c0_18] : memref<1x1x8xf32, #tpu.memory_space<vmem>>, vector<1x1x8xf32>
    %28 = vector.shape_cast %27 : vector<1x1x8xf32> to vector<1x8xf32>
    %c0_19 = arith.constant 0 : index
    %c0_20 = arith.constant 0 : index
    %c0_21 = arith.constant 0 : index
    %29 = vector.load %arg10[%c0_19, %c0_20, %c0_21] : memref<4x8x8xbf16, #tpu.memory_space<vmem>>, vector<1x8x8xbf16>
    %30 = vector.shape_cast %29 : vector<1x8x8xbf16> to vector<8x8xbf16>
    %c0_22 = arith.constant 0 : index
    %c0_23 = arith.constant 0 : index
    %c0_24 = arith.constant 0 : index
    %31 = vector.load %arg11[%c0_22, %c0_23, %c0_24] : memref<4x8x8xbf16, #tpu.memory_space<vmem>>, vector<1x8x8xbf16>
    %32 = vector.shape_cast %31 : vector<1x8x8xbf16> to vector<8x8xbf16>
    %c0_25 = arith.constant 0 : index
    %c0_26 = arith.constant 0 : index
    %c0_27 = arith.constant 0 : index
    %33 = vector.load %arg12[%c0_25, %c0_26, %c0_27] : memref<4x8x8xbf16, #tpu.memory_space<vmem>>, vector<1x8x8xbf16>
    %34 = vector.shape_cast %33 : vector<1x8x8xbf16> to vector<8x8xbf16>
    %cst_28 = arith.constant dense<0.000000e+00> : vector<8x8xf32>
    %35 = tpu.matmul %30, %32, %cst_28 {dimension_numbers = #tpu.dot_dimension_numbers<[1], [1], [0], [0], [0, 0, 1, 0], [], []>} : vector<8x8xbf16>, vector<8x8xbf16>, vector<8x8xf32> -> vector<8x8xf32>
    %36 = vector.broadcast %28 : vector<1x8xf32> to vector<8x8xf32>
    %37 = arith.addf %35, %36 : vector<8x8xf32>
    %cst_29 = arith.constant dense<0xFF800000> : vector<8xf32>
    %38 = vector.multi_reduction <maximumf>, %37, %cst_29 [1] : vector<8x8xf32> to vector<8xf32>
    %39 = vector.shape_cast %38 : vector<8xf32> to vector<8x1xf32>
    %40 = vector.broadcast %39 : vector<8x1xf32> to vector<8x8xf32>
    %41 = arith.subf %37, %40 : vector<8x8xf32>
    %42 = math.exp %41 : vector<8x8xf32>
    %cst_30 = arith.constant dense<0.000000e+00> : vector<8xf32>
    %43 = vector.multi_reduction <add>, %42, %cst_30 [1] : vector<8x8xf32> to vector<8xf32>
    %44 = vector.shape_cast %43 : vector<8xf32> to vector<8x1xf32>
    %45 = tpu.reciprocal %44 {approx = true} : vector<8x1xf32> -> vector<8x1xf32>
    %46 = vector.broadcast %45 : vector<8x1xf32> to vector<8x8xf32>
    %47 = arith.mulf %42, %46 : vector<8x8xf32>
    %48 = arith.truncf %47 : vector<8x8xf32> to vector<8x8xbf16>
    %cst_31 = arith.constant dense<0.000000e+00> : vector<8x8xf32>
    %49 = tpu.matmul %48, %34, %cst_31 {dimension_numbers = #tpu.dot_dimension_numbers<[1], [0], [0], [1], [0, 0, 1, 1], [], []>} : vector<8x8xbf16>, vector<8x8xbf16>, vector<8x8xf32> -> vector<8x8xf32>
    %c1_32 = arith.constant 1 : index
    %c0_33 = arith.constant 0 : index
    %c0_34 = arith.constant 0 : index
    %50 = vector.load %arg10[%c1_32, %c0_33, %c0_34] : memref<4x8x8xbf16, #tpu.memory_space<vmem>>, vector<1x8x8xbf16>
    %51 = vector.shape_cast %50 : vector<1x8x8xbf16> to vector<8x8xbf16>
    %c1_35 = arith.constant 1 : index
    %c0_36 = arith.constant 0 : index
    %c0_37 = arith.constant 0 : index
    %52 = vector.load %arg11[%c1_35, %c0_36, %c0_37] : memref<4x8x8xbf16, #tpu.memory_space<vmem>>, vector<1x8x8xbf16>
    %53 = vector.shape_cast %52 : vector<1x8x8xbf16> to vector<8x8xbf16>
    %c1_38 = arith.constant 1 : index
    %c0_39 = arith.constant 0 : index
    %c0_40 = arith.constant 0 : index
    %54 = vector.load %arg12[%c1_38, %c0_39, %c0_40] : memref<4x8x8xbf16, #tpu.memory_space<vmem>>, vector<1x8x8xbf16>
    %55 = vector.shape_cast %54 : vector<1x8x8xbf16> to vector<8x8xbf16>
    %cst_41 = arith.constant dense<0.000000e+00> : vector<8x8xf32>
    %56 = tpu.matmul %51, %53, %cst_41 {dimension_numbers = #tpu.dot_dimension_numbers<[1], [1], [0], [0], [0, 0, 1, 0], [], []>} : vector<8x8xbf16>, vector<8x8xbf16>, vector<8x8xf32> -> vector<8x8xf32>
    %57 = vector.broadcast %28 : vector<1x8xf32> to vector<8x8xf32>
    %58 = arith.addf %56, %57 : vector<8x8xf32>
    %cst_42 = arith.constant dense<0xFF800000> : vector<8xf32>
    %59 = vector.multi_reduction <maximumf>, %58, %cst_42 [1] : vector<8x8xf32> to vector<8xf32>
    %60 = vector.shape_cast %59 : vector<8xf32> to vector<8x1xf32>
    %61 = vector.broadcast %60 : vector<8x1xf32> to vector<8x8xf32>
    %62 = arith.subf %58, %61 : vector<8x8xf32>
    %63 = math.exp %62 : vector<8x8xf32>
    %cst_43 = arith.constant dense<0.000000e+00> : vector<8xf32>
    %64 = vector.multi_reduction <add>, %63, %cst_43 [1] : vector<8x8xf32> to vector<8xf32>
    %65 = vector.shape_cast %64 : vector<8xf32> to vector<8x1xf32>
    %66 = tpu.reciprocal %65 {approx = true} : vector<8x1xf32> -> vector<8x1xf32>
    %67 = vector.broadcast %66 : vector<8x1xf32> to vector<8x8xf32>
    %68 = arith.mulf %63, %67 : vector<8x8xf32>
    %69 = arith.truncf %68 : vector<8x8xf32> to vector<8x8xbf16>
    %cst_44 = arith.constant dense<0.000000e+00> : vector<8x8xf32>
    %70 = tpu.matmul %69, %55, %cst_44 {dimension_numbers = #tpu.dot_dimension_numbers<[1], [0], [0], [1], [0, 0, 1, 1], [], []>} : vector<8x8xbf16>, vector<8x8xbf16>, vector<8x8xf32> -> vector<8x8xf32>
    %c2_45 = arith.constant 2 : index
    %c0_46 = arith.constant 0 : index
    %c0_47 = arith.constant 0 : index
    %71 = vector.load %arg10[%c2_45, %c0_46, %c0_47] : memref<4x8x8xbf16, #tpu.memory_space<vmem>>, vector<1x8x8xbf16>
    %72 = vector.shape_cast %71 : vector<1x8x8xbf16> to vector<8x8xbf16>
    %c2_48 = arith.constant 2 : index
    %c0_49 = arith.constant 0 : index
    %c0_50 = arith.constant 0 : index
    %73 = vector.load %arg11[%c2_48, %c0_49, %c0_50] : memref<4x8x8xbf16, #tpu.memory_space<vmem>>, vector<1x8x8xbf16>
    %74 = vector.shape_cast %73 : vector<1x8x8xbf16> to vector<8x8xbf16>
    %c2_51 = arith.constant 2 : index
    %c0_52 = arith.constant 0 : index
    %c0_53 = arith.constant 0 : index
    %75 = vector.load %arg12[%c2_51, %c0_52, %c0_53] : memref<4x8x8xbf16, #tpu.memory_space<vmem>>, vector<1x8x8xbf16>
    %76 = vector.shape_cast %75 : vector<1x8x8xbf16> to vector<8x8xbf16>
    %cst_54 = arith.constant dense<0.000000e+00> : vector<8x8xf32>
    %77 = tpu.matmul %72, %74, %cst_54 {dimension_numbers = #tpu.dot_dimension_numbers<[1], [1], [0], [0], [0, 0, 1, 0], [], []>} : vector<8x8xbf16>, vector<8x8xbf16>, vector<8x8xf32> -> vector<8x8xf32>
    %78 = vector.broadcast %28 : vector<1x8xf32> to vector<8x8xf32>
    %79 = arith.addf %77, %78 : vector<8x8xf32>
    %cst_55 = arith.constant dense<0xFF800000> : vector<8xf32>
    %80 = vector.multi_reduction <maximumf>, %79, %cst_55 [1] : vector<8x8xf32> to vector<8xf32>
    %81 = vector.shape_cast %80 : vector<8xf32> to vector<8x1xf32>
    %82 = vector.broadcast %81 : vector<8x1xf32> to vector<8x8xf32>
    %83 = arith.subf %79, %82 : vector<8x8xf32>
    %84 = math.exp %83 : vector<8x8xf32>
    %cst_56 = arith.constant dense<0.000000e+00> : vector<8xf32>
    %85 = vector.multi_reduction <add>, %84, %cst_56 [1] : vector<8x8xf32> to vector<8xf32>
    %86 = vector.shape_cast %85 : vector<8xf32> to vector<8x1xf32>
    %87 = tpu.reciprocal %86 {approx = true} : vector<8x1xf32> -> vector<8x1xf32>
    %88 = vector.broadcast %87 : vector<8x1xf32> to vector<8x8xf32>
    %89 = arith.mulf %84, %88 : vector<8x8xf32>
    %90 = arith.truncf %89 : vector<8x8xf32> to vector<8x8xbf16>
    %cst_57 = arith.constant dense<0.000000e+00> : vector<8x8xf32>
    %91 = tpu.matmul %90, %76, %cst_57 {dimension_numbers = #tpu.dot_dimension_numbers<[1], [0], [0], [1], [0, 0, 1, 1], [], []>} : vector<8x8xbf16>, vector<8x8xbf16>, vector<8x8xf32> -> vector<8x8xf32>
    %c3_58 = arith.constant 3 : index
    %c0_59 = arith.constant 0 : index
    %c0_60 = arith.constant 0 : index
    %92 = vector.load %arg10[%c3_58, %c0_59, %c0_60] : memref<4x8x8xbf16, #tpu.memory_space<vmem>>, vector<1x8x8xbf16>
    %93 = vector.shape_cast %92 : vector<1x8x8xbf16> to vector<8x8xbf16>
    %c3_61 = arith.constant 3 : index
    %c0_62 = arith.constant 0 : index
    %c0_63 = arith.constant 0 : index
    %94 = vector.load %arg11[%c3_61, %c0_62, %c0_63] : memref<4x8x8xbf16, #tpu.memory_space<vmem>>, vector<1x8x8xbf16>
    %95 = vector.shape_cast %94 : vector<1x8x8xbf16> to vector<8x8xbf16>
    %c3_64 = arith.constant 3 : index
    %c0_65 = arith.constant 0 : index
    %c0_66 = arith.constant 0 : index
    %96 = vector.load %arg12[%c3_64, %c0_65, %c0_66] : memref<4x8x8xbf16, #tpu.memory_space<vmem>>, vector<1x8x8xbf16>
    %97 = vector.shape_cast %96 : vector<1x8x8xbf16> to vector<8x8xbf16>
    %cst_67 = arith.constant dense<0.000000e+00> : vector<8x8xf32>
    %98 = tpu.matmul %93, %95, %cst_67 {dimension_numbers = #tpu.dot_dimension_numbers<[1], [1], [0], [0], [0, 0, 1, 0], [], []>} : vector<8x8xbf16>, vector<8x8xbf16>, vector<8x8xf32> -> vector<8x8xf32>
    %99 = vector.broadcast %28 : vector<1x8xf32> to vector<8x8xf32>
    %100 = arith.addf %98, %99 : vector<8x8xf32>
    %cst_68 = arith.constant dense<0xFF800000> : vector<8xf32>
    %101 = vector.multi_reduction <maximumf>, %100, %cst_68 [1] : vector<8x8xf32> to vector<8xf32>
    %102 = vector.shape_cast %101 : vector<8xf32> to vector<8x1xf32>
    %103 = vector.broadcast %102 : vector<8x1xf32> to vector<8x8xf32>
    %104 = arith.subf %100, %103 : vector<8x8xf32>
    %105 = math.exp %104 : vector<8x8xf32>
    %cst_69 = arith.constant dense<0.000000e+00> : vector<8xf32>
    %106 = vector.multi_reduction <add>, %105, %cst_69 [1] : vector<8x8xf32> to vector<8xf32>
    %107 = vector.shape_cast %106 : vector<8xf32> to vector<8x1xf32>
    %108 = tpu.reciprocal %107 {approx = true} : vector<8x1xf32> -> vector<8x1xf32>
    %109 = vector.broadcast %108 : vector<8x1xf32> to vector<8x8xf32>
    %110 = arith.mulf %105, %109 : vector<8x8xf32>
    %111 = arith.truncf %110 : vector<8x8xf32> to vector<8x8xbf16>
    %cst_70 = arith.constant dense<0.000000e+00> : vector<8x8xf32>
    %112 = tpu.matmul %111, %97, %cst_70 {dimension_numbers = #tpu.dot_dimension_numbers<[1], [0], [0], [1], [0, 0, 1, 1], [], []>} : vector<8x8xbf16>, vector<8x8xbf16>, vector<8x8xf32> -> vector<8x8xf32>
    %113 = tpu.concatenate %49, %70, %91, %112 in 1 : vector<8x8xf32>, vector<8x8xf32>, vector<8x8xf32>, vector<8x8xf32> -> vector<8x32xf32>
    %c0_71 = arith.constant 0 : index
    %c0_72 = arith.constant 0 : index
    %c0_73 = arith.constant 0 : index
    %114 = vector.load %arg9[%c0_71, %c0_72, %c0_73] : memref<1x8x32xf32, #tpu.memory_space<vmem>>, vector<1x8x32xf32>
    %115 = vector.shape_cast %114 : vector<1x8x32xf32> to vector<8x32xf32>
    %116 = vector.shape_cast %113 : vector<8x32xf32> to vector<1x8x32xf32>
    tpu.vector_store %arg9[%c0_71, %c0_72, %c0_73], %116 {strides = array<i32>} : memref<1x8x32xf32, #tpu.memory_space<vmem>>, vector<1x8x32xf32>,
    return
  }
  func.func @transform_0(%arg0: i32, %arg1: i32) -> (i32, i32, i32) {
    %c0_i32 = arith.constant 0 : i32
    %c0_i32_0 = arith.constant 0 : i32
    return %arg0, %arg1, %c0_i32 : i32, i32, i32
  }
  func.func @transform_1(%arg0: i32, %arg1: i32) -> (i32, i32, i32) {
    %c0_i32 = arith.constant 0 : i32
    %c0_i32_0 = arith.constant 0 : i32
    %c0_i32_1 = arith.constant 0 : i32
    return %arg0, %c0_i32, %c0_i32_0 : i32, i32, i32
  }
  func.func @transform_2(%arg0: i32, %arg1: i32) -> (i32, i32) {
    %c0_i32 = arith.constant 0 : i32
    %c0_i32_0 = arith.constant 0 : i32
    %c0_i32_1 = arith.constant 0 : i32
    return %c0_i32, %c0_i32_0 : i32, i32
  }
  func.func @transform_3(%arg0: i32, %arg1: i32) -> (i32, i32) {
    %c0_i32 = arith.constant 0 : i32
    %c0_i32_0 = arith.constant 0 : i32
    %c0_i32_1 = arith.constant 0 : i32
    return %c0_i32, %c0_i32_0 : i32, i32
  }
  func.func @transform_4(%arg0: i32, %arg1: i32) -> (i32, i32) {
    %c0_i32 = arith.constant 0 : i32
    %c0_i32_0 = arith.constant 0 : i32
    %c0_i32_1 = arith.constant 0 : i32
    return %c0_i32, %c0_i32_0 : i32, i32
  }
  func.func @transform_5(%arg0: i32, %arg1: i32) -> (i32, i32) {
    %c0_i32 = arith.constant 0 : i32
    %c0_i32_0 = arith.constant 0 : i32
    %c0_i32_1 = arith.constant 0 : i32
    return %c0_i32, %c0_i32_0 : i32, i32
  }
  func.func @transform_6(%arg0: i32, %arg1: i32) -> (i32, i32, i32) {
    %c0_i32 = arith.constant 0 : i32
    %c0_i32_0 = arith.constant 0 : i32
    %c0_i32_1 = arith.constant 0 : i32
    return %arg0, %c0_i32, %c0_i32_0 : i32, i32, i32
  }
  func.func @transform_7(%arg0: i32, %arg1: i32) -> (i32, i32, i32) {
    %c0_i32 = arith.constant 0 : i32
    %c0_i32_0 = arith.constant 0 : i32
    return %arg0, %arg1, %c0_i32 : i32, i32, i32
  }
}

module attributes {stable_mosaic.version = 11 : i64} {
  func.func @_bert_self_attn_kernel(%arg0: i32, %arg1: i32, %arg2: memref<1x8x32xbf16, #tpu.memory_space<vmem>>, %arg3: memref<1x8x32xbf16, #tpu.memory_space<vmem>>, %arg4: memref<32x32xbf16, #tpu.memory_space<vmem>>, %arg5: memref<32x64xbf16, #tpu.memory_space<vmem>>, %arg6: memref<1x32xf32, #tpu.memory_space<vmem>>, %arg7: memref<1x64xf32, #tpu.memory_space<vmem>>, %arg8: memref<1x1x8xf32, #tpu.memory_space<vmem>>, %arg9: memref<1x8x32xf32, #tpu.memory_space<vmem>>, %arg10: memref<4x8x8xbf16, #tpu.memory_space<vmem>>, %arg11: memref<4x8x8xbf16, #tpu.memory_space<vmem>>, %arg12: memref<4x8x8xbf16, #tpu.memory_space<vmem>>) attributes {dimension_semantics = [#tpu.dimension_semantics<parallel>, #tpu.dimension_semantics<arbitrary>], iteration_bounds = array<i64: 2, 1>, scalar_prefetch = 0 : i64, scratch_operands = 3 : i64, tpu.core_type = #tpu.core_type<tc>, window_params = [{transform_indices = @transform_0, window_bounds = array<i64: 1, 8, 32>}, {transform_indices = @transform_1, window_bounds = array<i64: 1, 8, 32>}, {pipeline_mode = #tpu.pipeline_mode<synchronous>, transform_indices = @transform_2, window_bounds = array<i64: 32, 32>}, {pipeline_mode = #tpu.pipeline_mode<synchronous>, transform_indices = @transform_3, window_bounds = array<i64: 32, 64>}, {pipeline_mode = #tpu.pipeline_mode<synchronous>, transform_indices = @transform_4, window_bounds = array<i64: 1, 32>}, {pipeline_mode = #tpu.pipeline_mode<synchronous>, transform_indices = @transform_5, window_bounds = array<i64: 1, 64>}, {transform_indices = @transform_6, window_bounds = array<i64: 1, 1, 8>}, {transform_indices = @transform_7, window_bounds = array<i64: 1, 8, 32>}]} {
    %c0_i32 = arith.constant 0 : i32
    %0 = arith.cmpi eq, %arg1, %c0_i32 : i32
    %1 = arith.extui %0 : i1 to i32
    %c0_i32_0 = arith.constant 0 : i32
    %2 = arith.cmpi ne, %1, %c0_i32_0 : i32
    scf.if %2 {
      %c0_74 = arith.constant 0 : index
      %c0_75 = arith.constant 0 : index
      %c0_76 = arith.constant 0 : index
      %117 = vector.load %arg3[%c0_74, %c0_75, %c0_76] : memref<1x8x32xbf16, #tpu.memory_space<vmem>>, vector<1x8x32xbf16>
      %118 = vector.shape_cast %117 : vector<1x8x32xbf16> to vector<8x32xbf16>
      %c0_77 = arith.constant 0 : index
      %c0_78 = arith.constant 0 : index
      %119 = vector.load %arg5[%c0_77, %c0_78] : memref<32x64xbf16, #tpu.memory_space<vmem>>, vector<32x64xbf16>
      %cst_79 = arith.constant dense<0.000000e+00> : vector<8x64xf32>
      %120 = tpu.matmul %118, %119, %cst_79 {dimension_numbers = #tpu.dot_dimension_numbers<[1], [0], [0], [1], [0, 0, 1, 1], [], []>} : vector<8x32xbf16>, vector<32x64xbf16>, vector<8x64xf32> -> vector<8x64xf32>
      %c0_80 = arith.constant 0 : index
      %c0_81 = arith.constant 0 : index
      %121 = vector.load %arg7[%c0_80, %c0_81] : memref<1x64xf32, #tpu.memory_space<vmem>>, vector<1x64xf32>
      %122 = vector.broadcast %121 : vector<1x64xf32> to vector<8x64xf32>
      %123 = arith.addf %120, %122 : vector<8x64xf32>
      %124 = arith.truncf %123 : vector<8x64xf32> to vector<8x64xbf16>
      %125 = vector.extract_strided_slice %124 {offsets = [0, 0], sizes = [8, 8], strides = [1, 1]} : vector<8x64xbf16> to vector<8x8xbf16>
      %c0_82 = arith.constant 0 : index
      %c0_83 = arith.constant 0 : index
      %c0_84 = arith.constant 0 : index
      %126 = vector.load %arg11[%c0_82, %c0_83, %c0_84] : memref<4x8x8xbf16, #tpu.memory_space<vmem>>, vector<1x8x8xbf16>
      %127 = vector.shape_cast %126 : vector<1x8x8xbf16> to vector<8x8xbf16>
      %128 = vector.shape_cast %125 : vector<8x8xbf16> to vector<1x8x8xbf16>
      tpu.vector_store %arg11[%c0_82, %c0_83, %c0_84], %128 {strides = array<i32>} : memref<4x8x8xbf16, #tpu.memory_space<vmem>>, vector<1x8x8xbf16>,
      %129 = vector.extract_strided_slice %124 {offsets = [0, 32], sizes = [8, 8], strides = [1, 1]} : vector<8x64xbf16> to vector<8x8xbf16>
      %c0_85 = arith.constant 0 : index
      %c0_86 = arith.constant 0 : index
      %c0_87 = arith.constant 0 : index
      %130 = vector.load %arg12[%c0_85, %c0_86, %c0_87] : memref<4x8x8xbf16, #tpu.memory_space<vmem>>, vector<1x8x8xbf16>
      %131 = vector.shape_cast %130 : vector<1x8x8xbf16> to vector<8x8xbf16>
      %132 = vector.shape_cast %129 : vector<8x8xbf16> to vector<1x8x8xbf16>
      tpu.vector_store %arg12[%c0_85, %c0_86, %c0_87], %132 {strides = array<i32>} : memref<4x8x8xbf16, #tpu.memory_space<vmem>>, vector<1x8x8xbf16>,
      %133 = vector.extract_strided_slice %124 {offsets = [0, 8], sizes = [8, 8], strides = [1, 1]} : vector<8x64xbf16> to vector<8x8xbf16>
      %c1_88 = arith.constant 1 : index
      %c0_89 = arith.constant 0 : index
      %c0_90 = arith.constant 0 : index
      %134 = vector.load %arg11[%c1_88, %c0_89, %c0_90] : memref<4x8x8xbf16, #tpu.memory_space<vmem>>, vector<1x8x8xbf16>
      %135 = vector.shape_cast %134 : vector<1x8x8xbf16> to vector<8x8xbf16>
      %136 = vector.shape_cast %133 : vector<8x8xbf16> to vector<1x8x8xbf16>
      tpu.vector_store %arg11[%c1_88, %c0_89, %c0_90], %136 {strides = array<i32>} : memref<4x8x8xbf16, #tpu.memory_space<vmem>>, vector<1x8x8xbf16>,
      %137 = vector.extract_strided_slice %124 {offsets = [0, 40], sizes = [8, 8], strides = [1, 1]} : vector<8x64xbf16> to vector<8x8xbf16>
      %c1_91 = arith.constant 1 : index
      %c0_92 = arith.constant 0 : index
      %c0_93 = arith.constant 0 : index
      %138 = vector.load %arg12[%c1_91, %c0_92, %c0_93] : memref<4x8x8xbf16, #tpu.memory_space<vmem>>, vector<1x8x8xbf16>
      %139 = vector.shape_cast %138 : vector<1x8x8xbf16> to vector<8x8xbf16>
      %140 = vector.shape_cast %137 : vector<8x8xbf16> to vector<1x8x8xbf16>
      tpu.vector_store %arg12[%c1_91, %c0_92, %c0_93], %140 {strides = array<i32>} : memref<4x8x8xbf16, #tpu.memory_space<vmem>>, vector<1x8x8xbf16>,
      %141 = vector.extract_strided_slice %124 {offsets = [0, 16], sizes = [8, 8], strides = [1, 1]} : vector<8x64xbf16> to vector<8x8xbf16>
      %c2_94 = arith.constant 2 : index
      %c0_95 = arith.constant 0 : index
      %c0_96 = arith.constant 0 : index
      %142 = vector.load %arg11[%c2_94, %c0_95, %c0_96] : memref<4x8x8xbf16, #tpu.memory_space<vmem>>, vector<1x8x8xbf16>
      %143 = vector.shape_cast %142 : vector<1x8x8xbf16> to vector<8x8xbf16>
      %144 = vector.shape_cast %141 : vector<8x8xbf16> to vector<1x8x8xbf16>
      tpu.vector_store %arg11[%c2_94, %c0_95, %c0_96], %144 {strides = array<i32>} : memref<4x8x8xbf16, #tpu.memory_space<vmem>>, vector<1x8x8xbf16>,
      %145 = vector.extract_strided_slice %124 {offsets = [0, 48], sizes = [8, 8], strides = [1, 1]} : vector<8x64xbf16> to vector<8x8xbf16>
      %c2_97 = arith.constant 2 : index
      %c0_98 = arith.constant 0 : index
      %c0_99 = arith.constant 0 : index
      %146 = vector.load %arg12[%c2_97, %c0_98, %c0_99] : memref<4x8x8xbf16, #tpu.memory_space<vmem>>, vector<1x8x8xbf16>
      %147 = vector.shape_cast %146 : vector<1x8x8xbf16> to vector<8x8xbf16>
      %148 = vector.shape_cast %145 : vector<8x8xbf16> to vector<1x8x8xbf16>
      tpu.vector_store %arg12[%c2_97, %c0_98, %c0_99], %148 {strides = array<i32>} : memref<4x8x8xbf16, #tpu.memory_space<vmem>>, vector<1x8x8xbf16>,
      %149 = vector.extract_strided_slice %124 {offsets = [0, 24], sizes = [8, 8], strides = [1, 1]} : vector<8x64xbf16> to vector<8x8xbf16>
      %c3_100 = arith.constant 3 : index
      %c0_101 = arith.constant 0 : index
      %c0_102 = arith.constant 0 : index
      %150 = vector.load %arg11[%c3_100, %c0_101, %c0_102] : memref<4x8x8xbf16, #tpu.memory_space<vmem>>, vector<1x8x8xbf16>
      %151 = vector.shape_cast %150 : vector<1x8x8xbf16> to vector<8x8xbf16>
      %152 = vector.shape_cast %149 : vector<8x8xbf16> to vector<1x8x8xbf16>
      tpu.vector_store %arg11[%c3_100, %c0_101, %c0_102], %152 {strides = array<i32>} : memref<4x8x8xbf16, #tpu.memory_space<vmem>>, vector<1x8x8xbf16>,
      %153 = vector.extract_strided_slice %124 {offsets = [0, 56], sizes = [8, 8], strides = [1, 1]} : vector<8x64xbf16> to vector<8x8xbf16>
      %c3_103 = arith.constant 3 : index
      %c0_104 = arith.constant 0 : index
      %c0_105 = arith.constant 0 : index
      %154 = vector.load %arg12[%c3_103, %c0_104, %c0_105] : memref<4x8x8xbf16, #tpu.memory_space<vmem>>, vector<1x8x8xbf16>
      %155 = vector.shape_cast %154 : vector<1x8x8xbf16> to vector<8x8xbf16>
      %156 = vector.shape_cast %153 : vector<8x8xbf16> to vector<1x8x8xbf16>
      tpu.vector_store %arg12[%c3_103, %c0_104, %c0_105], %156 {strides = array<i32>} : memref<4x8x8xbf16, #tpu.memory_space<vmem>>, vector<1x8x8xbf16>,
    } else {
    }
    %c0 = arith.constant 0 : index
    %c0_1 = arith.constant 0 : index
    %c0_2 = arith.constant 0 : index
    %3 = vector.load %arg2[%c0, %c0_1, %c0_2] : memref<1x8x32xbf16, #tpu.memory_space<vmem>>, vector<1x8x32xbf16>
    %4 = vector.shape_cast %3 : vector<1x8x32xbf16> to vector<8x32xbf16>
    %c0_3 = arith.constant 0 : index
    %c0_4 = arith.constant 0 : index
    %5 = vector.load %arg4[%c0_3, %c0_4] : memref<32x32xbf16, #tpu.memory_space<vmem>>, vector<32x32xbf16>
    %cst = arith.constant dense<0.000000e+00> : vector<8x32xf32>
    %6 = tpu.matmul %4, %5, %cst {dimension_numbers = #tpu.dot_dimension_numbers<[1], [0], [0], [1], [0, 0, 1, 1], [], []>} : vector<8x32xbf16>, vector<32x32xbf16>, vector<8x32xf32> -> vector<8x32xf32>
    %c0_5 = arith.constant 0 : index
    %c0_6 = arith.constant 0 : index
    %7 = vector.load %arg6[%c0_5, %c0_6] : memref<1x32xf32, #tpu.memory_space<vmem>>, vector<1x32xf32>
    %8 = vector.broadcast %7 : vector<1x32xf32> to vector<8x32xf32>
    %9 = arith.addf %6, %8 : vector<8x32xf32>
    %10 = arith.truncf %9 : vector<8x32xf32> to vector<8x32xbf16>
    %11 = vector.extract_strided_slice %10 {offsets = [0, 0], sizes = [8, 8], strides = [1, 1]} : vector<8x32xbf16> to vector<8x8xbf16>
    %c0_7 = arith.constant 0 : index
    %c0_8 = arith.constant 0 : index
    %c0_9 = arith.constant 0 : index
    %12 = vector.load %arg10[%c0_7, %c0_8, %c0_9] : memref<4x8x8xbf16, #tpu.memory_space<vmem>>, vector<1x8x8xbf16>
    %13 = vector.shape_cast %12 : vector<1x8x8xbf16> to vector<8x8xbf16>
    %14 = vector.shape_cast %11 : vector<8x8xbf16> to vector<1x8x8xbf16>
    tpu.vector_store %arg10[%c0_7, %c0_8, %c0_9], %14 {strides = array<i32>} : memref<4x8x8xbf16, #tpu.memory_space<vmem>>, vector<1x8x8xbf16>,
    %15 = vector.extract_strided_slice %10 {offsets = [0, 8], sizes = [8, 8], strides = [1, 1]} : vector<8x32xbf16> to vector<8x8xbf16>
    %c1 = arith.constant 1 : index
    %c0_10 = arith.constant 0 : index
    %c0_11 = arith.constant 0 : index
    %16 = vector.load %arg10[%c1, %c0_10, %c0_11] : memref<4x8x8xbf16, #tpu.memory_space<vmem>>, vector<1x8x8xbf16>
    %17 = vector.shape_cast %16 : vector<1x8x8xbf16> to vector<8x8xbf16>
    %18 = vector.shape_cast %15 : vector<8x8xbf16> to vector<1x8x8xbf16>
    tpu.vector_store %arg10[%c1, %c0_10, %c0_11], %18 {strides = array<i32>} : memref<4x8x8xbf16, #tpu.memory_space<vmem>>, vector<1x8x8xbf16>,
    %19 = vector.extract_strided_slice %10 {offsets = [0, 16], sizes = [8, 8], strides = [1, 1]} : vector<8x32xbf16> to vector<8x8xbf16>
    %c2 = arith.constant 2 : index
    %c0_12 = arith.constant 0 : index
    %c0_13 = arith.constant 0 : index
    %20 = vector.load %arg10[%c2, %c0_12, %c0_13] : memref<4x8x8xbf16, #tpu.memory_space<vmem>>, vector<1x8x8xbf16>
    %21 = vector.shape_cast %20 : vector<1x8x8xbf16> to vector<8x8xbf16>
    %22 = vector.shape_cast %19 : vector<8x8xbf16> to vector<1x8x8xbf16>
    tpu.vector_store %arg10[%c2, %c0_12, %c0_13], %22 {strides = array<i32>} : memref<4x8x8xbf16, #tpu.memory_space<vmem>>, vector<1x8x8xbf16>,
    %23 = vector.extract_strided_slice %10 {offsets = [0, 24], sizes = [8, 8], strides = [1, 1]} : vector<8x32xbf16> to vector<8x8xbf16>
    %c3 = arith.constant 3 : index
    %c0_14 = arith.constant 0 : index
    %c0_15 = arith.constant 0 : index
    %24 = vector.load %arg10[%c3, %c0_14, %c0_15] : memref<4x8x8xbf16, #tpu.memory_space<vmem>>, vector<1x8x8xbf16>
    %25 = vector.shape_cast %24 : vector<1x8x8xbf16> to vector<8x8xbf16>
    %26 = vector.shape_cast %23 : vector<8x8xbf16> to vector<1x8x8xbf16>
    tpu.vector_store %arg10[%c3, %c0_14, %c0_15], %26 {strides = array<i32>} : memref<4x8x8xbf16, #tpu.memory_space<vmem>>, vector<1x8x8xbf16>,
    %c0_16 = arith.constant 0 : index
    %c0_17 = arith.constant 0 : index
    %c0_18 = arith.constant 0 : index
    %27 = vector.load %arg8[%c0_16, %c0_17, %c0_18] : memref<1x1x8xf32, #tpu.memory_space<vmem>>, vector<1x1x8xf32>
    %28 = vector.shape_cast %27 : vector<1x1x8xf32> to vector<1x8xf32>
    %c0_19 = arith.constant 0 : index
    %c0_20 = arith.constant 0 : index
    %c0_21 = arith.constant 0 : index
    %29 = vector.load %arg10[%c0_19, %c0_20, %c0_21] : memref<4x8x8xbf16, #tpu.memory_space<vmem>>, vector<1x8x8xbf16>
    %30 = vector.shape_cast %29 : vector<1x8x8xbf16> to vector<8x8xbf16>
    %c0_22 = arith.constant 0 : index
    %c0_23 = arith.constant 0 : index
    %c0_24 = arith.constant 0 : index
    %31 = vector.load %arg11[%c0_22, %c0_23, %c0_24] : memref<4x8x8xbf16, #tpu.memory_space<vmem>>, vector<1x8x8xbf16>
    %32 = vector.shape_cast %31 : vector<1x8x8xbf16> to vector<8x8xbf16>
    %c0_25 = arith.constant 0 : index
    %c0_26 = arith.constant 0 : index
    %c0_27 = arith.constant 0 : index
    %33 = vector.load %arg12[%c0_25, %c0_26, %c0_27] : memref<4x8x8xbf16, #tpu.memory_space<vmem>>, vector<1x8x8xbf16>
    %34 = vector.shape_cast %33 : vector<1x8x8xbf16> to vector<8x8xbf16>
    %cst_28 = arith.constant dense<0.000000e+00> : vector<8x8xf32>
    %35 = tpu.matmul %30, %32, %cst_28 {dimension_numbers = #tpu.dot_dimension_numbers<[1], [1], [0], [0], [0, 0, 1, 0], [], []>} : vector<8x8xbf16>, vector<8x8xbf16>, vector<8x8xf32> -> vector<8x8xf32>
    %36 = vector.broadcast %28 : vector<1x8xf32> to vector<8x8xf32>
    %37 = arith.addf %35, %36 : vector<8x8xf32>
    %cst_29 = arith.constant dense<0xFF800000> : vector<8xf32>
    %38 = vector.multi_reduction <maximumf>, %37, %cst_29 [1] : vector<8x8xf32> to vector<8xf32>
    %39 = vector.shape_cast %38 : vector<8xf32> to vector<8x1xf32>
    %40 = vector.broadcast %39 : vector<8x1xf32> to vector<8x8xf32>
    %41 = arith.subf %37, %40 : vector<8x8xf32>
    %42 = math.exp %41 : vector<8x8xf32>
    %cst_30 = arith.constant dense<0.000000e+00> : vector<8xf32>
    %43 = vector.multi_reduction <add>, %42, %cst_30 [1] : vector<8x8xf32> to vector<8xf32>
    %44 = vector.shape_cast %43 : vector<8xf32> to vector<8x1xf32>
    %45 = tpu.reciprocal %44 {approx = true} : vector<8x1xf32> -> vector<8x1xf32>
    %46 = vector.broadcast %45 : vector<8x1xf32> to vector<8x8xf32>
    %47 = arith.mulf %42, %46 : vector<8x8xf32>
    %48 = arith.truncf %47 : vector<8x8xf32> to vector<8x8xbf16>
    %cst_31 = arith.constant dense<0.000000e+00> : vector<8x8xf32>
    %49 = tpu.matmul %48, %34, %cst_31 {dimension_numbers = #tpu.dot_dimension_numbers<[1], [0], [0], [1], [0, 0, 1, 1], [], []>} : vector<8x8xbf16>, vector<8x8xbf16>, vector<8x8xf32> -> vector<8x8xf32>
    %c1_32 = arith.constant 1 : index
    %c0_33 = arith.constant 0 : index
    %c0_34 = arith.constant 0 : index
    %50 = vector.load %arg10[%c1_32, %c0_33, %c0_34] : memref<4x8x8xbf16, #tpu.memory_space<vmem>>, vector<1x8x8xbf16>
    %51 = vector.shape_cast %50 : vector<1x8x8xbf16> to vector<8x8xbf16>
    %c1_35 = arith.constant 1 : index
    %c0_36 = arith.constant 0 : index
    %c0_37 = arith.constant 0 : index
    %52 = vector.load %arg11[%c1_35, %c0_36, %c0_37] : memref<4x8x8xbf16, #tpu.memory_space<vmem>>, vector<1x8x8xbf16>
    %53 = vector.shape_cast %52 : vector<1x8x8xbf16> to vector<8x8xbf16>
    %c1_38 = arith.constant 1 : index
    %c0_39 = arith.constant 0 : index
    %c0_40 = arith.constant 0 : index
    %54 = vector.load %arg12[%c1_38, %c0_39, %c0_40] : memref<4x8x8xbf16, #tpu.memory_space<vmem>>, vector<1x8x8xbf16>
    %55 = vector.shape_cast %54 : vector<1x8x8xbf16> to vector<8x8xbf16>
    %cst_41 = arith.constant dense<0.000000e+00> : vector<8x8xf32>
    %56 = tpu.matmul %51, %53, %cst_41 {dimension_numbers = #tpu.dot_dimension_numbers<[1], [1], [0], [0], [0, 0, 1, 0], [], []>} : vector<8x8xbf16>, vector<8x8xbf16>, vector<8x8xf32> -> vector<8x8xf32>
    %57 = vector.broadcast %28 : vector<1x8xf32> to vector<8x8xf32>
    %58 = arith.addf %56, %57 : vector<8x8xf32>
    %cst_42 = arith.constant dense<0xFF800000> : vector<8xf32>
    %59 = vector.multi_reduction <maximumf>, %58, %cst_42 [1] : vector<8x8xf32> to vector<8xf32>
    %60 = vector.shape_cast %59 : vector<8xf32> to vector<8x1xf32>
    %61 = vector.broadcast %60 : vector<8x1xf32> to vector<8x8xf32>
    %62 = arith.subf %58, %61 : vector<8x8xf32>
    %63 = math.exp %62 : vector<8x8xf32>
    %cst_43 = arith.constant dense<0.000000e+00> : vector<8xf32>
    %64 = vector.multi_reduction <add>, %63, %cst_43 [1] : vector<8x8xf32> to vector<8xf32>
    %65 = vector.shape_cast %64 : vector<8xf32> to vector<8x1xf32>
    %66 = tpu.reciprocal %65 {approx = true} : vector<8x1xf32> -> vector<8x1xf32>
    %67 = vector.broadcast %66 : vector<8x1xf32> to vector<8x8xf32>
    %68 = arith.mulf %63, %67 : vector<8x8xf32>
    %69 = arith.truncf %68 : vector<8x8xf32> to vector<8x8xbf16>
    %cst_44 = arith.constant dense<0.000000e+00> : vector<8x8xf32>
    %70 = tpu.matmul %69, %55, %cst_44 {dimension_numbers = #tpu.dot_dimension_numbers<[1], [0], [0], [1], [0, 0, 1, 1], [], []>} : vector<8x8xbf16>, vector<8x8xbf16>, vector<8x8xf32> -> vector<8x8xf32>
    %c2_45 = arith.constant 2 : index
    %c0_46 = arith.constant 0 : index
    %c0_47 = arith.constant 0 : index
    %71 = vector.load %arg10[%c2_45, %c0_46, %c0_47] : memref<4x8x8xbf16, #tpu.memory_space<vmem>>, vector<1x8x8xbf16>
    %72 = vector.shape_cast %71 : vector<1x8x8xbf16> to vector<8x8xbf16>
    %c2_48 = arith.constant 2 : index
    %c0_49 = arith.constant 0 : index
    %c0_50 = arith.constant 0 : index
    %73 = vector.load %arg11[%c2_48, %c0_49, %c0_50] : memref<4x8x8xbf16, #tpu.memory_space<vmem>>, vector<1x8x8xbf16>
    %74 = vector.shape_cast %73 : vector<1x8x8xbf16> to vector<8x8xbf16>
    %c2_51 = arith.constant 2 : index
    %c0_52 = arith.constant 0 : index
    %c0_53 = arith.constant 0 : index
    %75 = vector.load %arg12[%c2_51, %c0_52, %c0_53] : memref<4x8x8xbf16, #tpu.memory_space<vmem>>, vector<1x8x8xbf16>
    %76 = vector.shape_cast %75 : vector<1x8x8xbf16> to vector<8x8xbf16>
    %cst_54 = arith.constant dense<0.000000e+00> : vector<8x8xf32>
    %77 = tpu.matmul %72, %74, %cst_54 {dimension_numbers = #tpu.dot_dimension_numbers<[1], [1], [0], [0], [0, 0, 1, 0], [], []>} : vector<8x8xbf16>, vector<8x8xbf16>, vector<8x8xf32> -> vector<8x8xf32>
    %78 = vector.broadcast %28 : vector<1x8xf32> to vector<8x8xf32>
    %79 = arith.addf %77, %78 : vector<8x8xf32>
    %cst_55 = arith.constant dense<0xFF800000> : vector<8xf32>
    %80 = vector.multi_reduction <maximumf>, %79, %cst_55 [1] : vector<8x8xf32> to vector<8xf32>
    %81 = vector.shape_cast %80 : vector<8xf32> to vector<8x1xf32>
    %82 = vector.broadcast %81 : vector<8x1xf32> to vector<8x8xf32>
    %83 = arith.subf %79, %82 : vector<8x8xf32>
    %84 = math.exp %83 : vector<8x8xf32>
    %cst_56 = arith.constant dense<0.000000e+00> : vector<8xf32>
    %85 = vector.multi_reduction <add>, %84, %cst_56 [1] : vector<8x8xf32> to vector<8xf32>
    %86 = vector.shape_cast %85 : vector<8xf32> to vector<8x1xf32>
    %87 = tpu.reciprocal %86 {approx = true} : vector<8x1xf32> -> vector<8x1xf32>
    %88 = vector.broadcast %87 : vector<8x1xf32> to vector<8x8xf32>
    %89 = arith.mulf %84, %88 : vector<8x8xf32>
    %90 = arith.truncf %89 : vector<8x8xf32> to vector<8x8xbf16>
    %cst_57 = arith.constant dense<0.000000e+00> : vector<8x8xf32>
    %91 = tpu.matmul %90, %76, %cst_57 {dimension_numbers = #tpu.dot_dimension_numbers<[1], [0], [0], [1], [0, 0, 1, 1], [], []>} : vector<8x8xbf16>, vector<8x8xbf16>, vector<8x8xf32> -> vector<8x8xf32>
    %c3_58 = arith.constant 3 : index
    %c0_59 = arith.constant 0 : index
    %c0_60 = arith.constant 0 : index
    %92 = vector.load %arg10[%c3_58, %c0_59, %c0_60] : memref<4x8x8xbf16, #tpu.memory_space<vmem>>, vector<1x8x8xbf16>
    %93 = vector.shape_cast %92 : vector<1x8x8xbf16> to vector<8x8xbf16>
    %c3_61 = arith.constant 3 : index
    %c0_62 = arith.constant 0 : index
    %c0_63 = arith.constant 0 : index
    %94 = vector.load %arg11[%c3_61, %c0_62, %c0_63] : memref<4x8x8xbf16, #tpu.memory_space<vmem>>, vector<1x8x8xbf16>
    %95 = vector.shape_cast %94 : vector<1x8x8xbf16> to vector<8x8xbf16>
    %c3_64 = arith.constant 3 : index
    %c0_65 = arith.constant 0 : index
    %c0_66 = arith.constant 0 : index
    %96 = vector.load %arg12[%c3_64, %c0_65, %c0_66] : memref<4x8x8xbf16, #tpu.memory_space<vmem>>, vector<1x8x8xbf16>
    %97 = vector.shape_cast %96 : vector<1x8x8xbf16> to vector<8x8xbf16>
    %cst_67 = arith.constant dense<0.000000e+00> : vector<8x8xf32>
    %98 = tpu.matmul %93, %95, %cst_67 {dimension_numbers = #tpu.dot_dimension_numbers<[1], [1], [0], [0], [0, 0, 1, 0], [], []>} : vector<8x8xbf16>, vector<8x8xbf16>, vector<8x8xf32> -> vector<8x8xf32>
    %99 = vector.broadcast %28 : vector<1x8xf32> to vector<8x8xf32>
    %100 = arith.addf %98, %99 : vector<8x8xf32>
    %cst_68 = arith.constant dense<0xFF800000> : vector<8xf32>
    %101 = vector.multi_reduction <maximumf>, %100, %cst_68 [1] : vector<8x8xf32> to vector<8xf32>
    %102 = vector.shape_cast %101 : vector<8xf32> to vector<8x1xf32>
    %103 = vector.broadcast %102 : vector<8x1xf32> to vector<8x8xf32>
    %104 = arith.subf %100, %103 : vector<8x8xf32>
    %105 = math.exp %104 : vector<8x8xf32>
    %cst_69 = arith.constant dense<0.000000e+00> : vector<8xf32>
    %106 = vector.multi_reduction <add>, %105, %cst_69 [1] : vector<8x8xf32> to vector<8xf32>
    %107 = vector.shape_cast %106 : vector<8xf32> to vector<8x1xf32>
    %108 = tpu.reciprocal %107 {approx = true} : vector<8x1xf32> -> vector<8x1xf32>
    %109 = vector.broadcast %108 : vector<8x1xf32> to vector<8x8xf32>
    %110 = arith.mulf %105, %109 : vector<8x8xf32>
    %111 = arith.truncf %110 : vector<8x8xf32> to vector<8x8xbf16>
    %cst_70 = arith.constant dense<0.000000e+00> : vector<8x8xf32>
    %112 = tpu.matmul %111, %97, %cst_70 {dimension_numbers = #tpu.dot_dimension_numbers<[1], [0], [0], [1], [0, 0, 1, 1], [], []>} : vector<8x8xbf16>, vector<8x8xbf16>, vector<8x8xf32> -> vector<8x8xf32>
    %113 = tpu.concatenate %49, %70, %91, %112 in 1 : vector<8x8xf32>, vector<8x8xf32>, vector<8x8xf32>, vector<8x8xf32> -> vector<8x32xf32>
    %c0_71 = arith.constant 0 : index
    %c0_72 = arith.constant 0 : index
    %c0_73 = arith.constant 0 : index
    %114 = vector.load %arg9[%c0_71, %c0_72, %c0_73] : memref<1x8x32xf32, #tpu.memory_space<vmem>>, vector<1x8x32xf32>
    %115 = vector.shape_cast %114 : vector<1x8x32xf32> to vector<8x32xf32>
    %116 = vector.shape_cast %113 : vector<8x32xf32> to vector<1x8x32xf32>
    tpu.vector_store %arg9[%c0_71, %c0_72, %c0_73], %116 {strides = array<i32>} : memref<1x8x32xf32, #tpu.memory_space<vmem>>, vector<1x8x32xf32>,
    return
  }
  func.func @transform_0(%arg0: i32, %arg1: i32) -> (i32, i32, i32) {
    %c0_i32 = arith.constant 0 : i32
    %c0_i32_0 = arith.constant 0 : i32
    return %arg0, %arg1, %c0_i32 : i32, i32, i32
  }
  func.func @transform_1(%arg0: i32, %arg1: i32) -> (i32, i32, i32) {
    %c0_i32 = arith.constant 0 : i32
    %c0_i32_0 = arith.constant 0 : i32
    %c0_i32_1 = arith.constant 0 : i32
    return %arg0, %c0_i32, %c0_i32_0 : i32, i32, i32
  }
  func.func @transform_2(%arg0: i32, %arg1: i32) -> (i32, i32) {
    %c0_i32 = arith.constant 0 : i32
    %c0_i32_0 = arith.constant 0 : i32
    %c0_i32_1 = arith.constant 0 : i32
    return %c0_i32, %c0_i32_0 : i32, i32
  }
  func.func @transform_3(%arg0: i32, %arg1: i32) -> (i32, i32) {
    %c0_i32 = arith.constant 0 : i32
    %c0_i32_0 = arith.constant 0 : i32
    %c0_i32_1 = arith.constant 0 : i32
    return %c0_i32, %c0_i32_0 : i32, i32
  }
  func.func @transform_4(%arg0: i32, %arg1: i32) -> (i32, i32) {
    %c0_i32 = arith.constant 0 : i32
    %c0_i32_0 = arith.constant 0 : i32
    %c0_i32_1 = arith.constant 0 : i32
    return %c0_i32, %c0_i32_0 : i32, i32
  }
  func.func @transform_5(%arg0: i32, %arg1: i32) -> (i32, i32) {
    %c0_i32 = arith.constant 0 : i32
    %c0_i32_0 = arith.constant 0 : i32
    %c0_i32_1 = arith.constant 0 : i32
    return %c0_i32, %c0_i32_0 : i32, i32
  }
  func.func @transform_6(%arg0: i32, %arg1: i32) -> (i32, i32, i32) {
    %c0_i32 = arith.constant 0 : i32
    %c0_i32_0 = arith.constant 0 : i32
    %c0_i32_1 = arith.constant 0 : i32
    return %arg0, %c0_i32, %c0_i32_0 : i32, i32, i32
  }
  func.func @transform_7(%arg0: i32, %arg1: i32) -> (i32, i32, i32) {
    %c0_i32 = arith.constant 0 : i32
    %c0_i32_0 = arith.constant 0 : i32
    return %arg0, %arg1, %c0_i32 : i32, i32, i32
  }
}

</mosaic_0001>

<bundles_post_ra>
// kernel: tpu_custom_call.1
= control target key start
LH: loop header
LB: loop body
LE: loop exit
PB: predicated region body
PF: predicated region fallthrough
CT: control target
= control target key end

     0   :  { %s1606_s0 = inlined_call_operand.hbm [shape: bf16[2,8,32], index: 0, kind: input, shape index: {}]   ;;  %s1607_s1 = inlined_call_operand.hbm [shape: bf16[2,8,32], index: 1, kind: input, shape index: {}]   ;;  %s1608_s2 = inlined_call_operand.hbm [shape: bf16[32,32], index: 2, kind: input, shape index: {}]   ;;  %s1609_s3 = inlined_call_operand.hbm [shape: bf16[32,64], index: 3, kind: input, shape index: {}]   ;;  %s1610_s4 = inlined_call_operand.vmem [shape: f32[1,32], index: 4, kind: input, shape index: {}]   ;;  %s1611_s5 = inlined_call_operand.vmem [shape: f32[1,64], index: 5, kind: input, shape index: {}]   ;;  %s1612_s6 = inlined_call_operand.vmem [shape: f32[2,1,8], index: 6, kind: input, shape index: {}]   ;;  %s1613_s7 = inlined_call_operand.hbm [shape: f32[2,8,32], index: 7, kind: output, shape index: {}]  }
   0x1   :  { %1619 = sst [smem:[#allocation25_spill]] %s1608_s2 }
   0x2   :  { %1620 = sst [smem:[#allocation26_spill]] %s1609_s3 }
   0x3   :  { %12 = vsyncpa [#allocation6], 0 }
   0x4   :  { %14 = vsyncpa [#allocation6 + $0x1], 0 }
   0x5   :  { %15 = vsyncpa [#allocation9], 0 }
   0x6   :  { %17 = vsyncpa [#allocation9 + $0x1], 0 }
   0x7   :  { %18 = vsyncpa [#allocation12], 0 }
   0x8   :  { %19 = vsyncpa [#allocation7], 0 }
   0x9   :  { %21 = vsyncpa [#allocation7 + $0x1], 0  ;;  %s1366_s24 = smov 0   ;;  %s1368_s25 = smov 0  }
   0xa   :  { %s1370_s26 = smov 0   ;;  %s1372_s27 = smov 0  }
   0xb   :  { %s1374_s28 = smov 0   ;;  %s1376_s29 = smov 0  }
   0xc LB: > { %1621 = sst [smem:[#allocation19_spill]] %s1290_s24  ;;  %s1397_s30 = sadd.s32 4294967295, %s1310_s29   ;;  %s1310_s29 = sphi %s1376_s29, %s27_s29   ;;  %s1306_s28 = sphi %s1374_s28, %s1643_s28   ;;  %s1302_s27 = sphi %s1372_s27, %s1638_s27   ;;  %s1298_s26 = sphi %s1370_s26, %s1642_s26   ;;  %s1294_s25 = sphi %s1368_s25, %s1641_s25   ;;  %s1290_s24 = sphi %s1366_s24, %s1640_s24  }
   0xd   : > { %1622 = sst [smem:[#allocation20_spill]] %s1298_s26  ;;  %p929_p0 = scmp.ge.s32.totalorder %s1310_s29, 1 }
   0xe   : > { %1623 = sst [smem:[#allocation21_spill]] %s1306_s28  ;;  %p62_p1 = scmp.eq.s32.totalorder %s1397_s30, 0 }
   0xf   : > { %p236_p2 = scmp.lt.s32.totalorder %s1310_s29, 3  ;;  %s1624_s2 = sld [smem:[#allocation25_spill]] }
  0x10   : > { %s1312_s12 = smov [#allocation10]   ;;  %p932_p6 = scmp.ge.s32.totalorder %s1310_s29, 2 }
  0x11   : > { %p1405_p3 = pnand %p929_p0, %p236_p2  ;;  %s249_s13 = sshll.u32 %s1312_s12, 4  ;;  %s250_s13 = int_to_ptr.vmem [resolvable:$true] %s249_s13 }
  0x12   : > { %s1626_s3 = sld [smem:[#allocation26_spill]]  ;;  %s1313_s17 = smov 64  }
  0x13   : > { %p991_p4 = pneg %p1405_p3  ;;  %s1314_s18 = smov 4  }
  0x14   : > { %s1315_s19 = smov [#allocation11]   ;;  %s928_s21 = sadd.s32 4294967294, %s1310_s29  }
  0x15   : > { %s247_s10 = sshll.u32 %s1624_s2, 4  ;;  %p992_p5 = pnand %p991_p4, %p62_p1  ;;  %s248_s10 = int_to_ptr.hbm [resolvable:$true] %s247_s10 }
  0x16   : > { %s263_s20 = sshll.u32 %s1315_s19, 4  ;;  %s39_s22 = sadd.s32 1, %s1306_s28  ;;  %s264_s20 = int_to_ptr.vmem [resolvable:$true] %s263_s20 }
  0x17   : > { %994 = dma.hbm_to_vmem [thread:$0]  (!%p992_p5), %s248_s10, 256, %s250_s13, [#allocation9], %s1313_s17, %s1313_s17, %s1314_s18  }
  0x18   : > { %s261_s16 = sshll.u32 %s1626_s3, 4  ;;  %p41_p7 = scmp.ge.s32.totalorder %s39_s22, 2  ;;  %s262_s16 = int_to_ptr.hbm [resolvable:$true] %s261_s16 }
  0x19   : > { %997 = dma.hbm_to_vmem [thread:$0]  (!%p992_p5), %s262_s16, 256, %s264_s20, [#allocation12], %s1313_s17, %s1313_s17, %s1314_s18  }
  0x1a   : > { %s48_s23 = sadd.s32 1, %s1298_s26  ;;  %p55_p8 = scmp.ne.s32.totalorder %s1298_s26, %s1294_s25 }
  0x1b   : > { %p56_p9 = scmp.eq.s32.totalorder %s1310_s29, 0  ;;  %s1645_s22 = smov (%p41_p7, %s39_s22), 0 }
  0x1c   : > { %1627 = sst [smem:[#allocation22_spill]] %s1645_s22  ;;  %p61_p11 = scmp.ne.s32.totalorder %s1294_s25, %s1290_s24 }
  0x1d   : > { %p1425_p10 = por %p56_p9, %p55_p8  ;;  %s43_s9 = ssub.s32 %s1306_s28, %s1645_s22 }
  0x1e   : > { %p223_p12 = scmp.eq.s32.totalorder %s1397_s30, 1  ;;  %p46_p13 = scmp.eq.s32.totalorder %s43_s9, 0 }
  0x1f   : > { %p1436_p0 = por %p62_p1, %p61_p11  ;;  %p229_p4 = scmp.eq.s32.totalorder %s928_s21, 1 }
  0x20   : > { %p1440_p2 = por %p223_p12, %p55_p8  ;;  %p1011_p7 = scmp.lt.s32.totalorder %s1310_s29, 2 }
  0x21   : > { %s1445_s13 = scalar_select %p46_p13, %s1298_s26, %s48_s23  }
  0x22   : > { %p1447_p5 = por %p229_p4, %p61_p11  ;;  %s283_s15 = sand.u32 1, %s1298_s26  }
  0x23   : > { %1631 = sst [smem:[#allocation23_spill]] %s1445_s13  ;;  %s934_s16 = sshll.u32 %s1306_s28, 2 }
  0x24   : > { %s1632_s14 = scalar_select %p1447_p5, 1, 0 }
  0x25   : > { %s933_s17 = sshll.u32 %s283_s15, 2  ;;  %s292_s20 = scalar_lea.hbm %s1606_s0, %s934_s16 }
  0x26   : > { %1633 = sst [smem:[#allocation24_spill]] %s1632_s14  ;;  %s294_s9 = sshll.u32 %s292_s20, 4  ;;  %s295_s9 = int_to_ptr.hbm [resolvable:$true] %s294_s9 }
  0x27   : > { %s287_s2 = scalar_lea.vmem [#allocation5], %s933_s17  ;;  %p999_p8 = pnand %p1011_p7, %p1425_p10 }
  0x28   : > { %s296_s3 = sshll.u32 %s287_s2, 4  ;;  %s311_s22 = scalar_lea.hbm %s1607_s1, %s934_s16  ;;  %s297_s3 = int_to_ptr.vmem [resolvable:$true] %s296_s3 }
  0x29   : > { %s303_s13 = sand.u32 1, %s1310_s29   ;;  %s284_s14 = scalar_lea.sflag [#allocation6], %s283_s15 }
  0x2a   : > { %1001 = dma.hbm_to_vmem [thread:$0]  (!%p999_p8), %s295_s9, 64, %s297_s3, %s284_s14  }
  0x2b   : > { %s313_s28 = sshll.u32 %s311_s22, 4  ;;  %s307_s26 = scalar_lea.vmem [#allocation8], %s933_s17  ;;  %s314_s28 = int_to_ptr.hbm [resolvable:$true] %s313_s28 }
  0x2c   : > { %s315_s24 = sshll.u32 %s307_s26, 4  ;;  %s304_s18 = scalar_lea.sflag [#allocation9], %s303_s13  ;;  %s316_s24 = int_to_ptr.vmem [resolvable:$true] %s315_s24 }
  0x2d   : > { %1004 = dma.hbm_to_vmem [thread:$0]  (!%p999_p8), %s314_s28, 64, %s316_s24, %s304_s18  }
  0x2e   : > { %330 = sbr.rel (%p1405_p3) target bundleno = 1293 (0x50d), region = 48  ;;  %s1466_s2 = sand.u32 (!%p1405_p3), 1, %s1294_s25  }
  0x2f   : > { %s938_s8 = sshll.u32 (!%p1405_p3), %s1466_s2, 2  ;;  %s333_s16 = scalar_lea.sflag (!%p1405_p3), [#allocation6], %s1466_s2 }
  0x30   : > { %s336_s15 = scalar_lea.vmem (!%p1405_p3), [#allocation5], %s938_s8 }
  0x33   : > { %1269 = dma.done.wait (%p1436_p0), %s333_s16, 64  }
  0x34   : > { %1271 = vsyncadd (%p1436_p0), %s333_s16, 4294967232  ;;  %s342_s3 = sand.u32 1, %s1397_s30   ;;  %s346_s26 = scalar_lea.vmem [#allocation8], %s938_s8 }
  0x35   : > { %s343_s24 = scalar_lea.sflag [#allocation9], %s342_s3 }
  0x36   : > { %1273 = dma.done.wait (%p1436_p0), %s343_s24, 64  }
  0x37   : > { %1275 = vsyncadd (%p1436_p0), %s343_s24, 4294967232 }
  0x38   : > { %1277 = dma.done.wait (%p62_p1), [#allocation9], 256  }
  0x39   : > { %1279 = vsyncadd (%p62_p1), [#allocation9], 4294967040 }
  0x3a   : > { %1281 = dma.done.wait (%p62_p1), [#allocation12], 256  }
  0x3b   : > { %1283 = vsyncadd (%p62_p1), [#allocation12], 4294967040  ;;  %v974_v0 = vld [vmem:[#allocation11 + $0x8] sm:$0xff]  ;;  %v976_v1 = vld [vmem:[#allocation10 + $0x8] sm:$0xff]  ;;  %vm425_vm0 = vcmask 261120   ;;  %p396_p1 = scmp.lt.s32.totalorder %s1302_s27, 1 }
  0x3c   : > { %v973_v2 = vld [vmem:[#allocation11] sm:$0xff]  ;;  %435 = vmatpush.bf16.msra.mxu0 %v974_v0  ;;  %511 = vmatpush.bf16.msra.mxu1 %v976_v1  ;;  %v975_v3 = vld [vmem:[#allocation10] sm:$0xff]  ;;  %v404_v4 = vld [vmem:[%s346_s26] sm:$0xf]  ;;  %vm443_vm1 = vcmask 60416   ;;  %s1316_s19 = smov 120  }
  0x3d   : > { %v480_v5 = vld [vmem:[%s336_s15] sm:$0xf]  ;;  %v1077_v6 = vld [vmem:[%s1611_s5] ss:$0 sm:$0xff]  ;;  %s1497_s10 = scalar_select %p396_p1, %s1302_s27, 1  ;;  %vm544_vm2 = vcmask 64512  }
  0x3e   : > { %v1078_v7 = vld [vmem:[%s1610_s4] ss:$0 sm:$0xff]  ;;  %s1317_s20 = smov 112   ;;  %s1318_s9 = smov 104   ;;  %vm579_vm3 = vcmask 1043456   ;;  %vm774_vm4 = vcmask 130048  }
  0x3f   : > { %s398_s17 = scalar_lea.vmem %s1612_s6, %s1497_s10  ;;  %s1319_s18 = smov 96   ;;  %vm776_vm5 = vcmask 195584  }
  0x40   : > { %436 = vmatpush.bf16.msra.mxu0 %v973_v2  ;;  %512 = vmatpush.bf16.msra.mxu1 %v975_v3  ;;  %v1524_v26 = vld [vmem:[%s398_s17] ss:$0 sm:$0xff]  ;;  %s1320_s8 = smov 88   ;;  %s1321_s16 = smov 80  }
  0x41   : > { %s1322_s15 = smov 72   ;;  %s1323_s3 = smov 16  }
  0x42   : > { %s1324_s24 = smov 8   ;;  %s1325_s26 = smov 24  }
  0x43   : > { %951 = vmatmul.msk.bf16.vlgmr.msra.gmra.mxu0 %vm425_vm0, %v404_v4  ;;  %960 = vmatmul.msk.bf16.vlgmr.msra.gmra.mxu1 %vm425_vm0, %v480_v5  ;;  %s942_s28 = sshll.u32 %s1466_s2, 3  ;;  %s970_s30 = sshll.u32 %s1302_s27, 3 }
  0x44   : > { %s791_s10 = scalar_lea.hbm %s1613_s7, %s970_s30  ;;  %s395_s13 = scalar_lea.vmem [#allocation13], %s942_s28 }
  0x45   : > { %s793_s14 = sshll.u32 %s395_s13, 4  ;;  %s795_s17 = sshll.u32 %s791_s10, 4  ;;  %s794_s14 = int_to_ptr.vmem [resolvable:$true] %s793_s14  ;;  %s796_s17 = int_to_ptr.hbm [resolvable:$true] %s795_s17 }
  0x46   : > { %s780_s27 = scalar_lea.sflag [#allocation7], %s1466_s2  ;;  %s1236_s23 = scalar_lea.hbm %s1613_s7, 16 }
  0xc0   : > { %v438_v8 = vpop.f32.mrf.mxu0  ;;  %v514_v9 = vpop.f32.mrf.mxu1 }
  0xc1   : > { %v439_v10 = vadd.f32 %v1077_v6, %v438_v8  ;;  %v515_v11 = vadd.f32 %v1078_v7, %v514_v9 }
  0xc3   : > { %v1499_v12 = vpack.c.bf16 %v439_v10, %v439_v10  ;;  %v518_v13 = vpack.c.bf16 %v515_v11, %v515_v11 }
  0xc5   : > { %520 = vst.msk [vmem:[#allocation2] sm:$0xf] %vm443_vm1, %v518_v13  ;;  %522 = vrot.lane.b32.xlu2 %v518_v13, %s1316_s19 }
  0xc6   : > { %444 = vst.msk [vmem:[#allocation3] sm:$0xf] %vm443_vm1, %v1499_v12 }
  0xc8   : > { %v440_v14 = vpop.f32.mrf.mxu0  ;;  %v516_v15 = vpop.f32.mrf.mxu1 }
  0xcc   : > { %v538_v18 = vld [vmem:[#allocation2] sm:$0xf] }
  0xcd   : > { %460 = vrot.lane.b32.xlu2 %v1499_v12, %s1317_s20  ;;  %v539_v16 = vld [vmem:[#allocation3] sm:$0xf] }
  0xce   : > { %v549_v17 = vsel %vm544_vm2, %v539_v16, 0 }
  0xcf   : > { %558 = vmatpush.bf16.xpose.msra.mxu2 %v549_v17 }
  0xd5   : > { %470 = vrot.lane.b32.xlu2 %v1499_v12, %s1318_s9 }
  0xd6   : > { %961 = vmatmul.msk.bf16.vlgmr.msra.gmra.mxu2 %vm544_vm2, %v538_v18 }
  0xdd   : > { %527 = vrot.lane.b32.xlu2 %v518_v13, %s1317_s20 }
 0x11f   : > { %v523_v19 = vpop.permute.xlu2 %522 }
 0x120   : > { %526 = vst.msk [vmem:[#allocation2 + $0x4] sm:$0xf] %vm443_vm1, %v523_v19 }
 0x127   : > { %v461_v20 = vpop.permute.xlu2 %460  ;;  %v596_v53 = vld [vmem:[#allocation2 + $0x4] sm:$0xf] }
 0x128   : > { %464 = vst.msk [vmem:[#allocation3 + $0x8] sm:$0xf] %vm443_vm1, %v461_v20 }
 0x12f   : > { %v471_v21 = vpop.permute.xlu2 %470  ;;  %v653_v22 = vld [vmem:[#allocation3 + $0x8] sm:$0xf] }
 0x130   : > { %474 = vst.msk [vmem:[#allocation3 + $0xc] sm:$0xf] %vm443_vm1, %v471_v21  ;;  %v660_v23 = vsel %vm544_vm2, %v653_v22, 0 }
 0x131   : > { %669 = vmatpush.bf16.xpose.msrb.mxu1 %v660_v23 }
 0x137   : > { %v528_v24 = vpop.permute.xlu2 %527  ;;  %v708_v49 = vld [vmem:[#allocation3 + $0xc] sm:$0xf] }
 0x138   : > { %531 = vst.msk [vmem:[#allocation2 + $0x8] sm:$0xf] %vm443_vm1, %v528_v24  ;;  %v715_v52 = vsel %vm544_vm2, %v708_v49, 0 }
 0x13f   : > { %v651_v25 = vld [vmem:[#allocation2 + $0x8] sm:$0xf] }
 0x140   : > { %965 = vmatmul.msk.bf16.vlgmr.msrb.gmra.mxu1 %vm544_vm2, %v651_v25 }
 0x159   : > { %v560_v27 = vpop.f32.mrf.mxu2 }
 0x15a   : > { %v561_v28 = vadd.f32 %v1524_v26, %v560_v27 }
 0x15c   : > { %v564_v29 = vsel %vm544_vm2, %v561_v28, -inf }
 0x15d   : > { %565 = vmax.xlane.f32.xlu0 %v564_v29 }
 0x161   : > { %v562_v30 = vpop.f32.mrf.mxu2 }
 0x171   : > { %446 = vrot.lane.b32.xlu0 %v1499_v12, %s1319_s18 }
 0x179   : > { %532 = vrot.lane.b32.xlu0 %v518_v13, %s1318_s9 }
 0x1bd   : > { %v671_v31 = vpop.f32.mrf.mxu1 }
 0x1be   : > { %v672_v42 = vadd.f32 %v1524_v26, %v671_v31 }
 0x1c0   : > { %v675_v43 = vsel %vm544_vm2, %v672_v42, -inf }
 0x1c5   : > { %v673_v32 = vpop.f32.mrf.mxu1 }
 0x1d0   : > { %v566_v33 = vpop.xlane.xlu0 %565 }
 0x1d1   : > { %v567_v34 = vsub.f32 %v561_v28, %v566_v33 }
 0x1d3   : > { %v568_v35 = vmul.f32 1.442695, %v567_v34 }
 0x1d5   : > { %1080 = vpow2.f32 %v568_v35 }
 0x1db   : > { %v1081_v36 = vpop.eup %1080 }
 0x1dc   : > { %v570_v37 = vsel %vm544_vm2, %v1081_v36, 0.0 }
 0x1dd   : > { %571 = vadd.xlane.f32.xlu1 %v570_v37 }
 0x1e3   : > { %v447_v38 = vpop.permute.xlu0 %446 }
 0x1e4   : > { %449 = vst.msk [vmem:[#allocation4] sm:$0xf] %vm443_vm1, %v447_v38 }
 0x1eb   : > { %v533_v39 = vpop.permute.xlu0 %532  ;;  %v540_v40 = vld [vmem:[#allocation4] sm:$0xf] }
 0x1ec   : > { %536 = vst.msk [vmem:[#allocation2 + $0xc] sm:$0xf] %vm443_vm1, %v533_v39  ;;  %v581_v41 = vsel %vm579_vm3, %v540_v40, 0 }
 0x1ed   : > { %590 = vmatpush.bf16.msra.mxu3 %v581_v41 }
 0x1f3   : > { %v706_v54 = vld [vmem:[#allocation2 + $0xc] sm:$0xf] }
 0x1f6   : > { %450 = vrot.lane.b32.xlu1 %v1499_v12, %s1316_s19  ;;  %s1230_s19 = sshra.s32 %s796_s17, 4  ;;  %s1231_s19 = int_to_ptr.hbm [resolvable:$true] %s1230_s19 }
 0x1f7   : > { %s1232_s20 = scalar_lea.hbm %s1231_s19, 8  ;;  %p1237_p11 = scmp.lt.s32.totalorder %s1231_s19, %s1613_s7 }
 0x1f8   : > { %p1233_p3 = scmp.ne.s32.totalorder %s1231_s19, %s1232_s20  ;;  %p1238_p12 = scmp.lt.s32.totalorder %s1236_s23, %s1232_s20 }
 0x1fa   : > { %p1234_p9 = pnand %p1233_p3, %p1440_p2  ;;  %p1239_p13 = por %p1238_p12, %p1237_p11 }
 0x1fc   : > { %p1235_p10 = pneg %p1234_p9 }
 0x1fe   : > { %p1240_p0 = pnand %p1239_p13, %p1235_p10 }
 0x220   : > { %676 = vmax.xlane.f32.xlu1 %v675_v43 }
 0x250   : > { %v572_v44 = vpop.xlane.xlu1 %571 }
 0x251   : > { %1082 = vrcp.f32 %v572_v44 }
 0x257   : > { %v1083_v45 = vpop.eup %1082 }
 0x258   : > { %v574_v46 = vmul.f32 %v1083_v45, %v1081_v36 }
 0x25a   : > { %v575_v47 = vpack.c.bf16 %v574_v46, %v574_v46 }
 0x25c   : > { %962 = vmatmul.msk.bf16.vlgmr.msra.gmra.mxu3 %vm544_vm2, %v575_v47 }
 0x268   : > { %v451_v48 = vpop.permute.xlu1 %450 }
 0x269   : > { %454 = vst.msk [vmem:[#allocation3 + $0x4] sm:$0xf] %vm443_vm1, %v451_v48 }
 0x270   : > { %v598_v50 = vld [vmem:[#allocation3 + $0x4] sm:$0xf] }
 0x271   : > { %v605_v51 = vsel %vm544_vm2, %v598_v50, 0 }
 0x272   : > { %614 = vmatpush.bf16.xpose.msrb.mxu3 %v605_v51 }
 0x279   : > { %963 = vmatmul.msk.bf16.vlgmr.msrb.gmra.mxu3 %vm544_vm2, %v596_v53 }
 0x27a   : > { %724 = vmatpush.bf16.xpose.msra.mxu3 %v715_v52 }
 0x289   : > { %967 = vmatmul.msk.bf16.vlgmr.msra.gmra.mxu3 %vm544_vm2, %v706_v54 }
 0x293   : > { %v677_v55 = vpop.xlane.xlu1 %676 }
 0x294   : > { %v678_v56 = vsub.f32 %v672_v42, %v677_v55 }
 0x296   : > { %v679_v57 = vmul.f32 1.442695, %v678_v56 }
 0x298   : > { %1084 = vpow2.f32 %v679_v57 }
 0x29e   : > { %v1085_v58 = vpop.eup %1084 }
 0x29f   : > { %v681_v59 = vsel %vm544_vm2, %v1085_v58, 0.0 }
 0x2a0   : > { %682 = vadd.xlane.f32.xlu1 %v681_v59 }
 0x2df   : > { %v1544_v60 = vpop.f32.mrf.mxu3 }
 0x2e7   : > { %v594_v61 = vpop.f32.mrf.mxu3 }
 0x2fc   : > { %v616_v62 = vpop.f32.mrf.mxu3 }
 0x2fd   : > { %v617_v63 = vadd.f32 %v1524_v26, %v616_v62 }
 0x2ff   : > { %v620_v0 = vsel %vm544_vm2, %v617_v63, -inf }
 0x300   : > { %621 = vmax.xlane.f32.xlu2 %v620_v0 }
 0x304   : > { %v618_v1 = vpop.f32.mrf.mxu3 }
 0x30c   : > { %v726_v2 = vpop.f32.mrf.mxu3 }
 0x30d   : > { %v727_v3 = vadd.f32 %v1524_v26, %v726_v2 }
 0x30f   : > { %v730_v4 = vsel %vm544_vm2, %v727_v3, -inf }
 0x310   : > { %731 = vmax.xlane.f32.xlu0 %v730_v4 }
 0x313   : > { %v683_v20 = vpop.xlane.xlu1 %682 }
 0x314   : > { %v728_v5 = vpop.f32.mrf.mxu3 }
 0x318   : > { %455 = vrot.lane.b32.xlu2 %v1499_v12, %s1320_s8 }
 0x324   : > { %465 = vrot.lane.b32.xlu0 %v1499_v12, %s1321_s16 }
 0x373   : > { %v622_v6 = vpop.xlane.xlu2 %621 }
 0x374   : > { %v623_v7 = vsub.f32 %v617_v63, %v622_v6 }
 0x376   : > { %v624_v8 = vmul.f32 1.442695, %v623_v7 }
 0x378   : > { %1086 = vpow2.f32 %v624_v8 }
 0x37b   : > { %v456_v9 = vpop.permute.xlu2 %455 }
 0x37c   : > { %459 = vst.msk [vmem:[#allocation4 + $0x4] sm:$0xf] %vm443_vm1, %v456_v9 }
 0x37e   : > { %v1087_v10 = vpop.eup %1086 }
 0x37f   : > { %v626_v11 = vsel %vm544_vm2, %v1087_v10, 0.0 }
 0x380   : > { %627 = vadd.xlane.f32.xlu1 %v626_v11 }
 0x383   : > { %v732_v13 = vpop.xlane.xlu0 %731  ;;  %v600_v14 = vld [vmem:[#allocation4 + $0x4] sm:$0xf] }
 0x384   : > { %v733_v15 = vsub.f32 %v727_v3, %v732_v13  ;;  %v636_v16 = vsel %vm579_vm3, %v600_v14, 0 }
 0x385   : > { %645 = vmatpush.bf16.msrb.mxu0 %v636_v16 }
 0x386   : > { %v734_v17 = vmul.f32 1.442695, %v733_v15 }
 0x388   : > { %1088 = vpow2.f32 %v734_v17 }
 0x389   : > { %1090 = vrcp.f32 %v683_v20 }
 0x38e   : > { %v1089_v18 = vpop.eup %1088 }
 0x38f   : > { %v736_v19 = vsel %vm544_vm2, %v1089_v18, 0.0  ;;  %v1091_v22 = vpop.eup %1090 }
 0x390   : > { %737 = vadd.xlane.f32.xlu2 %v736_v19  ;;  %v685_v23 = vmul.f32 %v1091_v22, %v1085_v58 }
 0x392   : > { %v686_v26 = vpack.c.bf16 %v685_v23, %v685_v23 }
 0x396   : > { %v466_v21 = vpop.permute.xlu0 %465 }
 0x397   : > { %469 = vst.msk [vmem:[#allocation4 + $0x8] sm:$0xf] %vm443_vm1, %v466_v21 }
 0x399   : > { %475 = vrot.lane.b32.xlu1 %v1499_v12, %s1322_s15 }
 0x39e   : > { %v655_v24 = vld [vmem:[#allocation4 + $0x8] sm:$0xf] }
 0x39f   : > { %v691_v25 = vsel %vm579_vm3, %v655_v24, 0 }
 0x3a0   : > { %700 = vmatpush.bf16.msrb.mxu2 %v691_v25 }
 0x3a3   : > { %966 = vmatmul.msk.bf16.vlgmr.msrb.gmra.mxu2 %vm544_vm2, %v686_v26 }
 0x3f3   : > { %v628_v27 = vpop.xlane.xlu1 %627 }
 0x3f4   : > { %1092 = vrcp.f32 %v628_v27 }
 0x3fa   : > { %v1093_v28 = vpop.eup %1092 }
 0x3fb   : > { %v630_v29 = vmul.f32 %v1093_v28, %v1087_v10 }
 0x3fd   : > { %v631_v30 = vpack.c.bf16 %v630_v29, %v630_v29 }
 0x3ff   : > { %964 = vmatmul.msk.bf16.vlgmr.msrb.gmra.mxu0 %vm544_vm2, %v631_v30 }
 0x403   : > { %v738_v31 = vpop.xlane.xlu2 %737 }
 0x404   : > { %1094 = vrcp.f32 %v738_v31 }
 0x40a   : > { %v1095_v12 = vpop.eup %1094 }
 0x40b   : > { %v476_v32 = vpop.permute.xlu1 %475  ;;  %v740_v33 = vmul.f32 %v1095_v12, %v1089_v18 }
 0x40c   : > { %479 = vst.msk [vmem:[#allocation4 + $0xc] sm:$0xf] %vm443_vm1, %v476_v32 }
 0x40d   : > { %v741_v36 = vpack.c.bf16 %v740_v33, %v740_v33 }
 0x413   : > { %v710_v34 = vld [vmem:[#allocation4 + $0xc] sm:$0xf] }
 0x414   : > { %v746_v35 = vsel %vm579_vm3, %v710_v34, 0 }
 0x415   : > { %755 = vmatpush.bf16.msra.mxu0 %v746_v35 }
 0x418   : > { %968 = vmatmul.msk.bf16.vlgmr.msra.gmra.mxu0 %vm544_vm2, %v741_v36 }
 0x426   : > { %v702_v37 = vpop.f32.mrf.mxu2 }
 0x427   : > { %766 = vrot.lane.b32.xlu0 %v702_v37, %s1323_s3 }
 0x42e   : > { %v704_v38 = vpop.f32.mrf.mxu2 }
 0x47c   : > { %v647_v39 = vpop.f32.mrf.mxu0 }
 0x47d   : > { %762 = vrot.lane.b32.xlu0 %v647_v39, %s1324_s24 }
 0x484   : > { %v649_v40 = vpop.f32.mrf.mxu0 }
 0x495   : > { %v757_v41 = vpop.f32.mrf.mxu0 }
 0x496   : > { %770 = vrot.lane.b32.xlu0 %v757_v41, %s1325_s26 }
 0x499   : > { %v767_v43 = vpop.permute.xlu0 %766 }
 0x49d   : > { %v759_v42 = vpop.f32.mrf.mxu0 }
 0x4ef   : > { %v763_v44 = vpop.permute.xlu0 %762 }
 0x4f0   : > { %v773_v45 = vsel %vm544_vm2, %v1544_v60, %v763_v44 }
 0x4f1   : > { %v775_v46 = vsel %vm774_vm4, %v773_v45, %v767_v43 }
 0x508   : > { %v771_v47 = vpop.permute.xlu0 %770 }
 0x509   : > { %v777_v48 = vsel %vm776_vm5, %v775_v46, %v771_v47 }
 0x50a   : > { %778 = vst.msk [vmem:[%s395_s13] sm:$0xff] %vm425_vm0, %v777_v48 }
 0x50b   : > { %1243 = shalt.err (!%p1240_p0)
}
 0x50c   : > { %989 = dma.vmem_to_hbm [thread:$0]  (%p1440_p2), %s794_s14, 128, %s796_s17, %s780_s27  }
 0x50d PF: > { %s1634_s2 = sld [smem:[#allocation19_spill]]  ;;  %p1006_p4 = pnand %p932_p6, %p1447_p5 }
 0x50f   : > { %p1007_p7 = pneg %p1006_p4 }
 0x513   : > { %s807_s15 = sand.u32 1, %s1634_s2  }
 0x514   : > { %s808_s3 = scalar_lea.sflag [#allocation7], %s807_s15 }
 0x515   : > { %1285 = dma.done.wait (%p1007_p7), %s808_s3, 128  }
 0x516   : > { %1287 = vsyncadd (%p1007_p7), %s808_s3, 4294967168  ;;  %s27_s29 = sadd.s32 1, %s1310_s29   ;;  %s1636_s26 = sld [smem:[#allocation20_spill]] }
 0x517   : > { %p24_p8 = scmp.ge.s32.totalorder %s27_s29, 4   ;;  %s1637_s28 = sld [smem:[#allocation23_spill]] }
 0x518   : > { %s1638_s27 = sld [smem:[#allocation21_spill]]  ;;  %s1640_s24 = smov %s1294_s25 }
 0x519   : > { %s1639_s12 = sld [smem:[#allocation22_spill]] }
 0x51b   :  { %26 = sbr.rel (!%p24_p8) target bundleno = 12 (0xc), region = 136 }
 0x51c   : > { %s1641_s25 = smov %s1636_s26 }
 0x51d   : > { %s1642_s26 = smov %s1637_s28 }
 0x51f   : > { %s1643_s28 = smov %s1639_s12 }
 0x520   :  { %814 = vsyncpa [#allocation6], 1 }
 0x521   :  { %816 = vsyncpa [#allocation6 + $0x1], 1 }
 0x522   :  { %817 = vsyncpa [#allocation9], 1 }
 0x523   :  { %819 = vsyncpa [#allocation9 + $0x1], 1 }
 0x524   :  { %820 = vsyncpa [#allocation12], 1 }
 0x525   :  { %821 = vsyncpa [#allocation7], 1 }
 0x526   :  { %823 = vsyncpa [#allocation7 + $0x1], 1 }

// kernel: tpu_custom_call.1
= control target key start
LH: loop header
LB: loop body
LE: loop exit
PB: predicated region body
PF: predicated region fallthrough
CT: control target
= control target key end

     0   :  { %s1606_s0 = inlined_call_operand.hbm [shape: bf16[2,8,32], index: 0, kind: input, shape index: {}]   ;;  %s1607_s1 = inlined_call_operand.hbm [shape: bf16[2,8,32], index: 1, kind: input, shape index: {}]   ;;  %s1608_s2 = inlined_call_operand.hbm [shape: bf16[32,32], index: 2, kind: input, shape index: {}]   ;;  %s1609_s3 = inlined_call_operand.hbm [shape: bf16[32,64], index: 3, kind: input, shape index: {}]   ;;  %s1610_s4 = inlined_call_operand.vmem [shape: f32[1,32], index: 4, kind: input, shape index: {}]   ;;  %s1611_s5 = inlined_call_operand.vmem [shape: f32[1,64], index: 5, kind: input, shape index: {}]   ;;  %s1612_s6 = inlined_call_operand.vmem [shape: f32[2,1,8], index: 6, kind: input, shape index: {}]   ;;  %s1613_s7 = inlined_call_operand.hbm [shape: f32[2,8,32], index: 7, kind: output, shape index: {}]  }
   0x1   :  { %1619 = sst [smem:[#allocation25_spill]] %s1608_s2 }
   0x2   :  { %1620 = sst [smem:[#allocation26_spill]] %s1609_s3 }
   0x3   :  { %12 = vsyncpa [#allocation6], 0 }
   0x4   :  { %14 = vsyncpa [#allocation6 + $0x1], 0 }
   0x5   :  { %15 = vsyncpa [#allocation9], 0 }
   0x6   :  { %17 = vsyncpa [#allocation9 + $0x1], 0 }
   0x7   :  { %18 = vsyncpa [#allocation12], 0 }
   0x8   :  { %19 = vsyncpa [#allocation7], 0 }
   0x9   :  { %21 = vsyncpa [#allocation7 + $0x1], 0  ;;  %s1366_s24 = smov 0   ;;  %s1368_s25 = smov 0  }
   0xa   :  { %s1370_s26 = smov 0   ;;  %s1372_s27 = smov 0  }
   0xb   :  { %s1374_s28 = smov 0   ;;  %s1376_s29 = smov 0  }
   0xc LB: > { %1621 = sst [smem:[#allocation19_spill]] %s1290_s24  ;;  %s1397_s30 = sadd.s32 4294967295, %s1310_s29   ;;  %s1310_s29 = sphi %s1376_s29, %s27_s29   ;;  %s1306_s28 = sphi %s1374_s28, %s1643_s28   ;;  %s1302_s27 = sphi %s1372_s27, %s1638_s27   ;;  %s1298_s26 = sphi %s1370_s26, %s1642_s26   ;;  %s1294_s25 = sphi %s1368_s25, %s1641_s25   ;;  %s1290_s24 = sphi %s1366_s24, %s1640_s24  }
   0xd   : > { %1622 = sst [smem:[#allocation20_spill]] %s1298_s26  ;;  %p929_p0 = scmp.ge.s32.totalorder %s1310_s29, 1 }
   0xe   : > { %1623 = sst [smem:[#allocation21_spill]] %s1306_s28  ;;  %p62_p1 = scmp.eq.s32.totalorder %s1397_s30, 0 }
   0xf   : > { %p236_p2 = scmp.lt.s32.totalorder %s1310_s29, 3  ;;  %s1624_s2 = sld [smem:[#allocation25_spill]] }
  0x10   : > { %s1312_s12 = smov [#allocation10]   ;;  %p932_p6 = scmp.ge.s32.totalorder %s1310_s29, 2 }
  0x11   : > { %p1405_p3 = pnand %p929_p0, %p236_p2  ;;  %s249_s13 = sshll.u32 %s1312_s12, 4  ;;  %s250_s13 = int_to_ptr.vmem [resolvable:$true] %s249_s13 }
  0x12   : > { %s1626_s3 = sld [smem:[#allocation26_spill]]  ;;  %s1313_s17 = smov 64  }
  0x13   : > { %p991_p4 = pneg %p1405_p3  ;;  %s1314_s18 = smov 4  }
  0x14   : > { %s1315_s19 = smov [#allocation11]   ;;  %s928_s21 = sadd.s32 4294967294, %s1310_s29  }
  0x15   : > { %s247_s10 = sshll.u32 %s1624_s2, 4  ;;  %p992_p5 = pnand %p991_p4, %p62_p1  ;;  %s248_s10 = int_to_ptr.hbm [resolvable:$true] %s247_s10 }
  0x16   : > { %s263_s20 = sshll.u32 %s1315_s19, 4  ;;  %s39_s22 = sadd.s32 1, %s1306_s28  ;;  %s264_s20 = int_to_ptr.vmem [resolvable:$true] %s263_s20 }
  0x17   : > { %994 = dma.hbm_to_vmem [thread:$0]  (!%p992_p5), %s248_s10, 256, %s250_s13, [#allocation9], %s1313_s17, %s1313_s17, %s1314_s18  }
  0x18   : > { %s261_s16 = sshll.u32 %s1626_s3, 4  ;;  %p41_p7 = scmp.ge.s32.totalorder %s39_s22, 2  ;;  %s262_s16 = int_to_ptr.hbm [resolvable:$true] %s261_s16 }
  0x19   : > { %997 = dma.hbm_to_vmem [thread:$0]  (!%p992_p5), %s262_s16, 256, %s264_s20, [#allocation12], %s1313_s17, %s1313_s17, %s1314_s18  }
  0x1a   : > { %s48_s23 = sadd.s32 1, %s1298_s26  ;;  %p55_p8 = scmp.ne.s32.totalorder %s1298_s26, %s1294_s25 }
  0x1b   : > { %p56_p9 = scmp.eq.s32.totalorder %s1310_s29, 0  ;;  %s1645_s22 = smov (%p41_p7, %s39_s22), 0 }
  0x1c   : > { %1627 = sst [smem:[#allocation22_spill]] %s1645_s22  ;;  %p61_p11 = scmp.ne.s32.totalorder %s1294_s25, %s1290_s24 }
  0x1d   : > { %p1425_p10 = por %p56_p9, %p55_p8  ;;  %s43_s9 = ssub.s32 %s1306_s28, %s1645_s22 }
  0x1e   : > { %p223_p12 = scmp.eq.s32.totalorder %s1397_s30, 1  ;;  %p46_p13 = scmp.eq.s32.totalorder %s43_s9, 0 }
  0x1f   : > { %p1436_p0 = por %p62_p1, %p61_p11  ;;  %p229_p4 = scmp.eq.s32.totalorder %s928_s21, 1 }
  0x20   : > { %p1440_p2 = por %p223_p12, %p55_p8  ;;  %p1011_p7 = scmp.lt.s32.totalorder %s1310_s29, 2 }
  0x21   : > { %s1445_s13 = scalar_select %p46_p13, %s1298_s26, %s48_s23  }
  0x22   : > { %p1447_p5 = por %p229_p4, %p61_p11  ;;  %s283_s15 = sand.u32 1, %s1298_s26  }
  0x23   : > { %1631 = sst [smem:[#allocation23_spill]] %s1445_s13  ;;  %s934_s16 = sshll.u32 %s1306_s28, 2 }
  0x24   : > { %s1632_s14 = scalar_select %p1447_p5, 1, 0 }
  0x25   : > { %s933_s17 = sshll.u32 %s283_s15, 2  ;;  %s292_s20 = scalar_lea.hbm %s1606_s0, %s934_s16 }
  0x26   : > { %1633 = sst [smem:[#allocation24_spill]] %s1632_s14  ;;  %s294_s9 = sshll.u32 %s292_s20, 4  ;;  %s295_s9 = int_to_ptr.hbm [resolvable:$true] %s294_s9 }
  0x27   : > { %s287_s2 = scalar_lea.vmem [#allocation5], %s933_s17  ;;  %p999_p8 = pnand %p1011_p7, %p1425_p10 }
  0x28   : > { %s296_s3 = sshll.u32 %s287_s2, 4  ;;  %s311_s22 = scalar_lea.hbm %s1607_s1, %s934_s16  ;;  %s297_s3 = int_to_ptr.vmem [resolvable:$true] %s296_s3 }
  0x29   : > { %s303_s13 = sand.u32 1, %s1310_s29   ;;  %s284_s14 = scalar_lea.sflag [#allocation6], %s283_s15 }
  0x2a   : > { %1001 = dma.hbm_to_vmem [thread:$0]  (!%p999_p8), %s295_s9, 64, %s297_s3, %s284_s14  }
  0x2b   : > { %s313_s28 = sshll.u32 %s311_s22, 4  ;;  %s307_s26 = scalar_lea.vmem [#allocation8], %s933_s17  ;;  %s314_s28 = int_to_ptr.hbm [resolvable:$true] %s313_s28 }
  0x2c   : > { %s315_s24 = sshll.u32 %s307_s26, 4  ;;  %s304_s18 = scalar_lea.sflag [#allocation9], %s303_s13  ;;  %s316_s24 = int_to_ptr.vmem [resolvable:$true] %s315_s24 }
  0x2d   : > { %1004 = dma.hbm_to_vmem [thread:$0]  (!%p999_p8), %s314_s28, 64, %s316_s24, %s304_s18  }
  0x2e   : > { %330 = sbr.rel (%p1405_p3) target bundleno = 1293 (0x50d), region = 48  ;;  %s1466_s2 = sand.u32 (!%p1405_p3), 1, %s1294_s25  }
  0x2f   : > { %s938_s8 = sshll.u32 (!%p1405_p3), %s1466_s2, 2  ;;  %s333_s16 = scalar_lea.sflag (!%p1405_p3), [#allocation6], %s1466_s2 }
  0x30   : > { %s336_s15 = scalar_lea.vmem (!%p1405_p3), [#allocation5], %s938_s8 }
  0x33   : > { %1269 = dma.done.wait (%p1436_p0), %s333_s16, 64  }
  0x34   : > { %1271 = vsyncadd (%p1436_p0), %s333_s16, 4294967232  ;;  %s342_s3 = sand.u32 1, %s1397_s30   ;;  %s346_s26 = scalar_lea.vmem [#allocation8], %s938_s8 }
  0x35   : > { %s343_s24 = scalar_lea.sflag [#allocation9], %s342_s3 }
  0x36   : > { %1273 = dma.done.wait (%p1436_p0), %s343_s24, 64  }
  0x37   : > { %1275 = vsyncadd (%p1436_p0), %s343_s24, 4294967232 }
  0x38   : > { %1277 = dma.done.wait (%p62_p1), [#allocation9], 256  }
  0x39   : > { %1279 = vsyncadd (%p62_p1), [#allocation9], 4294967040 }
  0x3a   : > { %1281 = dma.done.wait (%p62_p1), [#allocation12], 256  }
  0x3b   : > { %1283 = vsyncadd (%p62_p1), [#allocation12], 4294967040  ;;  %v974_v0 = vld [vmem:[#allocation11 + $0x8] sm:$0xff]  ;;  %v976_v1 = vld [vmem:[#allocation10 + $0x8] sm:$0xff]  ;;  %vm425_vm0 = vcmask 261120   ;;  %p396_p1 = scmp.lt.s32.totalorder %s1302_s27, 1 }
  0x3c   : > { %v973_v2 = vld [vmem:[#allocation11] sm:$0xff]  ;;  %435 = vmatpush.bf16.msra.mxu0 %v974_v0  ;;  %511 = vmatpush.bf16.msra.mxu1 %v976_v1  ;;  %v975_v3 = vld [vmem:[#allocation10] sm:$0xff]  ;;  %v404_v4 = vld [vmem:[%s346_s26] sm:$0xf]  ;;  %vm443_vm1 = vcmask 60416   ;;  %s1316_s19 = smov 120  }
  0x3d   : > { %v480_v5 = vld [vmem:[%s336_s15] sm:$0xf]  ;;  %v1077_v6 = vld [vmem:[%s1611_s5] ss:$0 sm:$0xff]  ;;  %s1497_s10 = scalar_select %p396_p1, %s1302_s27, 1  ;;  %vm544_vm2 = vcmask 64512  }
  0x3e   : > { %v1078_v7 = vld [vmem:[%s1610_s4] ss:$0 sm:$0xff]  ;;  %s1317_s20 = smov 112   ;;  %s1318_s9 = smov 104   ;;  %vm579_vm3 = vcmask 1043456   ;;  %vm774_vm4 = vcmask 130048  }
  0x3f   : > { %s398_s17 = scalar_lea.vmem %s1612_s6, %s1497_s10  ;;  %s1319_s18 = smov 96   ;;  %vm776_vm5 = vcmask 195584  }
  0x40   : > { %436 = vmatpush.bf16.msra.mxu0 %v973_v2  ;;  %512 = vmatpush.bf16.msra.mxu1 %v975_v3  ;;  %v1524_v26 = vld [vmem:[%s398_s17] ss:$0 sm:$0xff]  ;;  %s1320_s8 = smov 88   ;;  %s1321_s16 = smov 80  }
  0x41   : > { %s1322_s15 = smov 72   ;;  %s1323_s3 = smov 16  }
  0x42   : > { %s1324_s24 = smov 8   ;;  %s1325_s26 = smov 24  }
  0x43   : > { %951 = vmatmul.msk.bf16.vlgmr.msra.gmra.mxu0 %vm425_vm0, %v404_v4  ;;  %960 = vmatmul.msk.bf16.vlgmr.msra.gmra.mxu1 %vm425_vm0, %v480_v5  ;;  %s942_s28 = sshll.u32 %s1466_s2, 3  ;;  %s970_s30 = sshll.u32 %s1302_s27, 3 }
  0x44   : > { %s791_s10 = scalar_lea.hbm %s1613_s7, %s970_s30  ;;  %s395_s13 = scalar_lea.vmem [#allocation13], %s942_s28 }
  0x45   : > { %s793_s14 = sshll.u32 %s395_s13, 4  ;;  %s795_s17 = sshll.u32 %s791_s10, 4  ;;  %s794_s14 = int_to_ptr.vmem [resolvable:$true] %s793_s14  ;;  %s796_s17 = int_to_ptr.hbm [resolvable:$true] %s795_s17 }
  0x46   : > { %s780_s27 = scalar_lea.sflag [#allocation7], %s1466_s2  ;;  %s1236_s23 = scalar_lea.hbm %s1613_s7, 16 }
  0xc0   : > { %v438_v8 = vpop.f32.mrf.mxu0  ;;  %v514_v9 = vpop.f32.mrf.mxu1 }
  0xc1   : > { %v439_v10 = vadd.f32 %v1077_v6, %v438_v8  ;;  %v515_v11 = vadd.f32 %v1078_v7, %v514_v9 }
  0xc3   : > { %v1499_v12 = vpack.c.bf16 %v439_v10, %v439_v10  ;;  %v518_v13 = vpack.c.bf16 %v515_v11, %v515_v11 }
  0xc5   : > { %520 = vst.msk [vmem:[#allocation2] sm:$0xf] %vm443_vm1, %v518_v13  ;;  %522 = vrot.lane.b32.xlu2 %v518_v13, %s1316_s19 }
  0xc6   : > { %444 = vst.msk [vmem:[#allocation3] sm:$0xf] %vm443_vm1, %v1499_v12 }
  0xc8   : > { %v440_v14 = vpop.f32.mrf.mxu0  ;;  %v516_v15 = vpop.f32.mrf.mxu1 }
  0xcc   : > { %v538_v18 = vld [vmem:[#allocation2] sm:$0xf] }
  0xcd   : > { %460 = vrot.lane.b32.xlu2 %v1499_v12, %s1317_s20  ;;  %v539_v16 = vld [vmem:[#allocation3] sm:$0xf] }
  0xce   : > { %v549_v17 = vsel %vm544_vm2, %v539_v16, 0 }
  0xcf   : > { %558 = vmatpush.bf16.xpose.msra.mxu2 %v549_v17 }
  0xd5   : > { %470 = vrot.lane.b32.xlu2 %v1499_v12, %s1318_s9 }
  0xd6   : > { %961 = vmatmul.msk.bf16.vlgmr.msra.gmra.mxu2 %vm544_vm2, %v538_v18 }
  0xdd   : > { %527 = vrot.lane.b32.xlu2 %v518_v13, %s1317_s20 }
 0x11f   : > { %v523_v19 = vpop.permute.xlu2 %522 }
 0x120   : > { %526 = vst.msk [vmem:[#allocation2 + $0x4] sm:$0xf] %vm443_vm1, %v523_v19 }
 0x127   : > { %v461_v20 = vpop.permute.xlu2 %460  ;;  %v596_v53 = vld [vmem:[#allocation2 + $0x4] sm:$0xf] }
 0x128   : > { %464 = vst.msk [vmem:[#allocation3 + $0x8] sm:$0xf] %vm443_vm1, %v461_v20 }
 0x12f   : > { %v471_v21 = vpop.permute.xlu2 %470  ;;  %v653_v22 = vld [vmem:[#allocation3 + $0x8] sm:$0xf] }
 0x130   : > { %474 = vst.msk [vmem:[#allocation3 + $0xc] sm:$0xf] %vm443_vm1, %v471_v21  ;;  %v660_v23 = vsel %vm544_vm2, %v653_v22, 0 }
 0x131   : > { %669 = vmatpush.bf16.xpose.msrb.mxu1 %v660_v23 }
 0x137   : > { %v528_v24 = vpop.permute.xlu2 %527  ;;  %v708_v49 = vld [vmem:[#allocation3 + $0xc] sm:$0xf] }
 0x138   : > { %531 = vst.msk [vmem:[#allocation2 + $0x8] sm:$0xf] %vm443_vm1, %v528_v24  ;;  %v715_v52 = vsel %vm544_vm2, %v708_v49, 0 }
 0x13f   : > { %v651_v25 = vld [vmem:[#allocation2 + $0x8] sm:$0xf] }
 0x140   : > { %965 = vmatmul.msk.bf16.vlgmr.msrb.gmra.mxu1 %vm544_vm2, %v651_v25 }
 0x159   : > { %v560_v27 = vpop.f32.mrf.mxu2 }
 0x15a   : > { %v561_v28 = vadd.f32 %v1524_v26, %v560_v27 }
 0x15c   : > { %v564_v29 = vsel %vm544_vm2, %v561_v28, -inf }
 0x15d   : > { %565 = vmax.xlane.f32.xlu0 %v564_v29 }
 0x161   : > { %v562_v30 = vpop.f32.mrf.mxu2 }
 0x171   : > { %446 = vrot.lane.b32.xlu0 %v1499_v12, %s1319_s18 }
 0x179   : > { %532 = vrot.lane.b32.xlu0 %v518_v13, %s1318_s9 }
 0x1bd   : > { %v671_v31 = vpop.f32.mrf.mxu1 }
 0x1be   : > { %v672_v42 = vadd.f32 %v1524_v26, %v671_v31 }
 0x1c0   : > { %v675_v43 = vsel %vm544_vm2, %v672_v42, -inf }
 0x1c5   : > { %v673_v32 = vpop.f32.mrf.mxu1 }
 0x1d0   : > { %v566_v33 = vpop.xlane.xlu0 %565 }
 0x1d1   : > { %v567_v34 = vsub.f32 %v561_v28, %v566_v33 }
 0x1d3   : > { %v568_v35 = vmul.f32 1.442695, %v567_v34 }
 0x1d5   : > { %1080 = vpow2.f32 %v568_v35 }
 0x1db   : > { %v1081_v36 = vpop.eup %1080 }
 0x1dc   : > { %v570_v37 = vsel %vm544_vm2, %v1081_v36, 0.0 }
 0x1dd   : > { %571 = vadd.xlane.f32.xlu1 %v570_v37 }
 0x1e3   : > { %v447_v38 = vpop.permute.xlu0 %446 }
 0x1e4   : > { %449 = vst.msk [vmem:[#allocation4] sm:$0xf] %vm443_vm1, %v447_v38 }
 0x1eb   : > { %v533_v39 = vpop.permute.xlu0 %532  ;;  %v540_v40 = vld [vmem:[#allocation4] sm:$0xf] }
 0x1ec   : > { %536 = vst.msk [vmem:[#allocation2 + $0xc] sm:$0xf] %vm443_vm1, %v533_v39  ;;  %v581_v41 = vsel %vm579_vm3, %v540_v40, 0 }
 0x1ed   : > { %590 = vmatpush.bf16.msra.mxu3 %v581_v41 }
 0x1f3   : > { %v706_v54 = vld [vmem:[#allocation2 + $0xc] sm:$0xf] }
 0x1f6   : > { %450 = vrot.lane.b32.xlu1 %v1499_v12, %s1316_s19  ;;  %s1230_s19 = sshra.s32 %s796_s17, 4  ;;  %s1231_s19 = int_to_ptr.hbm [resolvable:$true] %s1230_s19 }
 0x1f7   : > { %s1232_s20 = scalar_lea.hbm %s1231_s19, 8  ;;  %p1237_p11 = scmp.lt.s32.totalorder %s1231_s19, %s1613_s7 }
 0x1f8   : > { %p1233_p3 = scmp.ne.s32.totalorder %s1231_s19, %s1232_s20  ;;  %p1238_p12 = scmp.lt.s32.totalorder %s1236_s23, %s1232_s20 }
 0x1fa   : > { %p1234_p9 = pnand %p1233_p3, %p1440_p2  ;;  %p1239_p13 = por %p1238_p12, %p1237_p11 }
 0x1fc   : > { %p1235_p10 = pneg %p1234_p9 }
 0x1fe   : > { %p1240_p0 = pnand %p1239_p13, %p1235_p10 }
 0x220   : > { %676 = vmax.xlane.f32.xlu1 %v675_v43 }
 0x250   : > { %v572_v44 = vpop.xlane.xlu1 %571 }
 0x251   : > { %1082 = vrcp.f32 %v572_v44 }
 0x257   : > { %v1083_v45 = vpop.eup %1082 }
 0x258   : > { %v574_v46 = vmul.f32 %v1083_v45, %v1081_v36 }
 0x25a   : > { %v575_v47 = vpack.c.bf16 %v574_v46, %v574_v46 }
 0x25c   : > { %962 = vmatmul.msk.bf16.vlgmr.msra.gmra.mxu3 %vm544_vm2, %v575_v47 }
 0x268   : > { %v451_v48 = vpop.permute.xlu1 %450 }
 0x269   : > { %454 = vst.msk [vmem:[#allocation3 + $0x4] sm:$0xf] %vm443_vm1, %v451_v48 }
 0x270   : > { %v598_v50 = vld [vmem:[#allocation3 + $0x4] sm:$0xf] }
 0x271   : > { %v605_v51 = vsel %vm544_vm2, %v598_v50, 0 }
 0x272   : > { %614 = vmatpush.bf16.xpose.msrb.mxu3 %v605_v51 }
 0x279   : > { %963 = vmatmul.msk.bf16.vlgmr.msrb.gmra.mxu3 %vm544_vm2, %v596_v53 }
 0x27a   : > { %724 = vmatpush.bf16.xpose.msra.mxu3 %v715_v52 }
 0x289   : > { %967 = vmatmul.msk.bf16.vlgmr.msra.gmra.mxu3 %vm544_vm2, %v706_v54 }
 0x293   : > { %v677_v55 = vpop.xlane.xlu1 %676 }
 0x294   : > { %v678_v56 = vsub.f32 %v672_v42, %v677_v55 }
 0x296   : > { %v679_v57 = vmul.f32 1.442695, %v678_v56 }
 0x298   : > { %1084 = vpow2.f32 %v679_v57 }
 0x29e   : > { %v1085_v58 = vpop.eup %1084 }
 0x29f   : > { %v681_v59 = vsel %vm544_vm2, %v1085_v58, 0.0 }
 0x2a0   : > { %682 = vadd.xlane.f32.xlu1 %v681_v59 }
 0x2df   : > { %v1544_v60 = vpop.f32.mrf.mxu3 }
 0x2e7   : > { %v594_v61 = vpop.f32.mrf.mxu3 }
 0x2fc   : > { %v616_v62 = vpop.f32.mrf.mxu3 }
 0x2fd   : > { %v617_v63 = vadd.f32 %v1524_v26, %v616_v62 }
 0x2ff   : > { %v620_v0 = vsel %vm544_vm2, %v617_v63, -inf }
 0x300   : > { %621 = vmax.xlane.f32.xlu2 %v620_v0 }
 0x304   : > { %v618_v1 = vpop.f32.mrf.mxu3 }
 0x30c   : > { %v726_v2 = vpop.f32.mrf.mxu3 }
 0x30d   : > { %v727_v3 = vadd.f32 %v1524_v26, %v726_v2 }
 0x30f   : > { %v730_v4 = vsel %vm544_vm2, %v727_v3, -inf }
 0x310   : > { %731 = vmax.xlane.f32.xlu0 %v730_v4 }
 0x313   : > { %v683_v20 = vpop.xlane.xlu1 %682 }
 0x314   : > { %v728_v5 = vpop.f32.mrf.mxu3 }
 0x318   : > { %455 = vrot.lane.b32.xlu2 %v1499_v12, %s1320_s8 }
 0x324   : > { %465 = vrot.lane.b32.xlu0 %v1499_v12, %s1321_s16 }
 0x373   : > { %v622_v6 = vpop.xlane.xlu2 %621 }
 0x374   : > { %v623_v7 = vsub.f32 %v617_v63, %v622_v6 }
 0x376   : > { %v624_v8 = vmul.f32 1.442695, %v623_v7 }
 0x378   : > { %1086 = vpow2.f32 %v624_v8 }
 0x37b   : > { %v456_v9 = vpop.permute.xlu2 %455 }
 0x37c   : > { %459 = vst.msk [vmem:[#allocation4 + $0x4] sm:$0xf] %vm443_vm1, %v456_v9 }
 0x37e   : > { %v1087_v10 = vpop.eup %1086 }
 0x37f   : > { %v626_v11 = vsel %vm544_vm2, %v1087_v10, 0.0 }
 0x380   : > { %627 = vadd.xlane.f32.xlu1 %v626_v11 }
 0x383   : > { %v732_v13 = vpop.xlane.xlu0 %731  ;;  %v600_v14 = vld [vmem:[#allocation4 + $0x4] sm:$0xf] }
 0x384   : > { %v733_v15 = vsub.f32 %v727_v3, %v732_v13  ;;  %v636_v16 = vsel %vm579_vm3, %v600_v14, 0 }
 0x385   : > { %645 = vmatpush.bf16.msrb.mxu0 %v636_v16 }
 0x386   : > { %v734_v17 = vmul.f32 1.442695, %v733_v15 }
 0x388   : > { %1088 = vpow2.f32 %v734_v17 }
 0x389   : > { %1090 = vrcp.f32 %v683_v20 }
 0x38e   : > { %v1089_v18 = vpop.eup %1088 }
 0x38f   : > { %v736_v19 = vsel %vm544_vm2, %v1089_v18, 0.0  ;;  %v1091_v22 = vpop.eup %1090 }
 0x390   : > { %737 = vadd.xlane.f32.xlu2 %v736_v19  ;;  %v685_v23 = vmul.f32 %v1091_v22, %v1085_v58 }
 0x392   : > { %v686_v26 = vpack.c.bf16 %v685_v23, %v685_v23 }
 0x396   : > { %v466_v21 = vpop.permute.xlu0 %465 }
 0x397   : > { %469 = vst.msk [vmem:[#allocation4 + $0x8] sm:$0xf] %vm443_vm1, %v466_v21 }
 0x399   : > { %475 = vrot.lane.b32.xlu1 %v1499_v12, %s1322_s15 }
 0x39e   : > { %v655_v24 = vld [vmem:[#allocation4 + $0x8] sm:$0xf] }
 0x39f   : > { %v691_v25 = vsel %vm579_vm3, %v655_v24, 0 }
 0x3a0   : > { %700 = vmatpush.bf16.msrb.mxu2 %v691_v25 }
 0x3a3   : > { %966 = vmatmul.msk.bf16.vlgmr.msrb.gmra.mxu2 %vm544_vm2, %v686_v26 }
 0x3f3   : > { %v628_v27 = vpop.xlane.xlu1 %627 }
 0x3f4   : > { %1092 = vrcp.f32 %v628_v27 }
 0x3fa   : > { %v1093_v28 = vpop.eup %1092 }
 0x3fb   : > { %v630_v29 = vmul.f32 %v1093_v28, %v1087_v10 }
 0x3fd   : > { %v631_v30 = vpack.c.bf16 %v630_v29, %v630_v29 }
 0x3ff   : > { %964 = vmatmul.msk.bf16.vlgmr.msrb.gmra.mxu0 %vm544_vm2, %v631_v30 }
 0x403   : > { %v738_v31 = vpop.xlane.xlu2 %737 }
 0x404   : > { %1094 = vrcp.f32 %v738_v31 }
 0x40a   : > { %v1095_v12 = vpop.eup %1094 }
 0x40b   : > { %v476_v32 = vpop.permute.xlu1 %475  ;;  %v740_v33 = vmul.f32 %v1095_v12, %v1089_v18 }
 0x40c   : > { %479 = vst.msk [vmem:[#allocation4 + $0xc] sm:$0xf] %vm443_vm1, %v476_v32 }
 0x40d   : > { %v741_v36 = vpack.c.bf16 %v740_v33, %v740_v33 }
 0x413   : > { %v710_v34 = vld [vmem:[#allocation4 + $0xc] sm:$0xf] }
 0x414   : > { %v746_v35 = vsel %vm579_vm3, %v710_v34, 0 }
 0x415   : > { %755 = vmatpush.bf16.msra.mxu0 %v746_v35 }
 0x418   : > { %968 = vmatmul.msk.bf16.vlgmr.msra.gmra.mxu0 %vm544_vm2, %v741_v36 }
 0x426   : > { %v702_v37 = vpop.f32.mrf.mxu2 }
 0x427   : > { %766 = vrot.lane.b32.xlu0 %v702_v37, %s1323_s3 }
 0x42e   : > { %v704_v38 = vpop.f32.mrf.mxu2 }
 0x47c   : > { %v647_v39 = vpop.f32.mrf.mxu0 }
 0x47d   : > { %762 = vrot.lane.b32.xlu0 %v647_v39, %s1324_s24 }
 0x484   : > { %v649_v40 = vpop.f32.mrf.mxu0 }
 0x495   : > { %v757_v41 = vpop.f32.mrf.mxu0 }
 0x496   : > { %770 = vrot.lane.b32.xlu0 %v757_v41, %s1325_s26 }
 0x499   : > { %v767_v43 = vpop.permute.xlu0 %766 }
 0x49d   : > { %v759_v42 = vpop.f32.mrf.mxu0 }
 0x4ef   : > { %v763_v44 = vpop.permute.xlu0 %762 }
 0x4f0   : > { %v773_v45 = vsel %vm544_vm2, %v1544_v60, %v763_v44 }
 0x4f1   : > { %v775_v46 = vsel %vm774_vm4, %v773_v45, %v767_v43 }
 0x508   : > { %v771_v47 = vpop.permute.xlu0 %770 }
 0x509   : > { %v777_v48 = vsel %vm776_vm5, %v775_v46, %v771_v47 }
 0x50a   : > { %778 = vst.msk [vmem:[%s395_s13] sm:$0xff] %vm425_vm0, %v777_v48 }
 0x50b   : > { %1243 = shalt.err (!%p1240_p0)
}
 0x50c   : > { %989 = dma.vmem_to_hbm [thread:$0]  (%p1440_p2), %s794_s14, 128, %s796_s17, %s780_s27  }
 0x50d PF: > { %s1634_s2 = sld [smem:[#allocation19_spill]]  ;;  %p1006_p4 = pnand %p932_p6, %p1447_p5 }
 0x50f   : > { %p1007_p7 = pneg %p1006_p4 }
 0x513   : > { %s807_s15 = sand.u32 1, %s1634_s2  }
 0x514   : > { %s808_s3 = scalar_lea.sflag [#allocation7], %s807_s15 }
 0x515   : > { %1285 = dma.done.wait (%p1007_p7), %s808_s3, 128  }
 0x516   : > { %1287 = vsyncadd (%p1007_p7), %s808_s3, 4294967168  ;;  %s27_s29 = sadd.s32 1, %s1310_s29   ;;  %s1636_s26 = sld [smem:[#allocation20_spill]] }
 0x517   : > { %p24_p8 = scmp.ge.s32.totalorder %s27_s29, 4   ;;  %s1637_s28 = sld [smem:[#allocation23_spill]] }
 0x518   : > { %s1638_s27 = sld [smem:[#allocation21_spill]]  ;;  %s1640_s24 = smov %s1294_s25 }
 0x519   : > { %s1639_s12 = sld [smem:[#allocation22_spill]] }
 0x51b   :  { %26 = sbr.rel (!%p24_p8) target bundleno = 12 (0xc), region = 136 }
 0x51c   : > { %s1641_s25 = smov %s1636_s26 }
 0x51d   : > { %s1642_s26 = smov %s1637_s28 }
 0x51f   : > { %s1643_s28 = smov %s1639_s12 }
 0x520   :  { %814 = vsyncpa [#allocation6], 1 }
 0x521   :  { %816 = vsyncpa [#allocation6 + $0x1], 1 }
 0x522   :  { %817 = vsyncpa [#allocation9], 1 }
 0x523   :  { %819 = vsyncpa [#allocation9 + $0x1], 1 }
 0x524   :  { %820 = vsyncpa [#allocation12], 1 }
 0x525   :  { %821 = vsyncpa [#allocation7], 1 }
 0x526   :  { %823 = vsyncpa [#allocation7 + $0x1], 1 }

</bundles_post_ra>
